<compile_context>
chip_gen: v5e
topology: v5e:2x2
jax: 0.10.0
libtpu: 0.0.40
codegen_flags: <defaults>
</compile_context>

<pallas_src>
import functools

import jax
import jax.numpy as jnp
from jax.experimental import pallas as pl
from jax.experimental.pallas import tpu as pltpu

NUM_CLASSES = 4          # C (no-object class is index NUM_CLASSES)
EOS_COEF = 0.1
COST_CLASS, COST_BBOX, COST_GIOU = 1.0, 5.0, 2.0   # DETR HungarianMatcher defaults
WEIGHT_DICT = {"loss_ce": 1.0, "loss_bbox": 5.0, "loss_giou": 2.0}  # stored, unused in forward
LOSSES = ["labels", "boxes", "cardinality"]

_BIG = 1e9


def _round_up(x, m):
    return ((x + m - 1) // m) * m


def _sum3(x):
    # full reduction of a rank-3 array to (1, 1, 1) without rank-0 intermediates
    s = jnp.sum(x, axis=2, keepdims=True)
    s = jnp.sum(s, axis=1, keepdims=True)
    return jnp.sum(s, axis=0, keepdims=True)


# ---------------------------------------------------------------------------
# Fused kernel: matcher cost + greedy assignment + all losses, one decoder
# layer per grid step, whole batch per step.
#   logits  (B, C1, Qp)   queries lane-dense (padded queries are all-zero)
#   pboxes  (B, 4,  Qp)   predicted boxes (cxcywh)
#   onehot  (B, Tp, C1)   one-hot of target labels (padded target rows = 0)
#   tboxes  (B, Tp, 4)    target boxes (cxcywh), padded rows = 0.5
#   out     (1, 1, 8)     [loss_ce, class_error, cardinality, loss_bbox, loss_giou, 0, 0, 0]
# ---------------------------------------------------------------------------
def _detr_criterion_kernel(logits_ref, pboxes_ref, onehot_ref, tboxes_ref, out_ref,
                           *, num_classes, eos_coef, num_queries,
                           cost_class, cost_bbox, cost_giou):
    f32 = jnp.float32
    logits = logits_ref[...]                                  # (B, C1, Qp)
    pb = pboxes_ref[...]                                      # (B, 4, Qp)
    oh = onehot_ref[...]                                      # (B, Tp, C1)
    tb = tboxes_ref[...]                                      # (B, Tp, 4)
    B, C1, Qp = logits.shape
    Tp = oh.shape[1]

    # ---- shared softmax pieces (classes in the sublane axis) ----
    logit_max = jnp.max(logits, axis=1, keepdims=True)        # (B,1,Qp)
    e = jnp.exp(logits - logit_max)
    sum_e = jnp.sum(e, axis=1, keepdims=True)                 # (B,1,Qp)
    prob = e * pl.reciprocal(sum_e, approx=True)              # matcher-only use

    # ---- validity masks / label values ----
    q_iota_i = jax.lax.broadcasted_iota(jnp.int32, (1, 1, Qp), 2)
    q_iota = q_iota_i.astype(f32)
    valid_q = (q_iota_i < num_queries).astype(f32)            # (1,1,Qp) real queries
    valid_t = jnp.sum(oh, axis=2, keepdims=True)              # (B,Tp,1) real targets
    c_iota = jax.lax.broadcasted_iota(jnp.int32, (1, 1, C1), 2).astype(f32)
    label_val = jnp.sum(oh * c_iota, axis=2, keepdims=True)   # (B,Tp,1) float class id

    # ---- matcher cost (approx reciprocals OK: only ranking matters) ----
    # class cost on the VPU: -(sum_c onehot[...,c] * prob[:,c,:]); C1 is tiny,
    # a batched MXU matmul would be <1% utilized and need bf16 casts.
    c_cls = jnp.zeros((B, Tp, Qp), f32)
    for c in range(C1):
        c_cls = c_cls + oh[:, :, c:c + 1] * prob[:, c:c + 1, :]
    c_cls = -c_cls

    scx, scy, sw, sh = pb[:, 0:1, :], pb[:, 1:2, :], pb[:, 2:3, :], pb[:, 3:4, :]   # (B,1,Qp)
    tcx, tcy, tw, th = tb[:, :, 0:1], tb[:, :, 1:2], tb[:, :, 2:3], tb[:, :, 3:4]   # (B,Tp,1)

    c_l1 = (jnp.abs(tcx - scx) + jnp.abs(tcy - scy)
            + jnp.abs(tw - sw) + jnp.abs(th - sh))                                   # (B,Tp,Qp)

    sx0, sy0, sx1, sy1 = scx - 0.5 * sw, scy - 0.5 * sh, scx + 0.5 * sw, scy + 0.5 * sh
    tx0, ty0, tx1, ty1 = tcx - 0.5 * tw, tcy - 0.5 * th, tcx + 0.5 * tw, tcy + 0.5 * th
    area_s = (sx1 - sx0) * (sy1 - sy0)
    area_t = (tx1 - tx0) * (ty1 - ty0)
    iw = jnp.maximum(jnp.minimum(sx1, tx1) - jnp.maximum(sx0, tx0), 0.0)
    ih = jnp.maximum(jnp.minimum(sy1, ty1) - jnp.maximum(sy0, ty0), 0.0)
    inter = iw * ih
    union = area_s + area_t - inter
    iou = inter * pl.reciprocal(union, approx=True)
    hull = ((jnp.maximum(sx1, tx1) - jnp.minimum(sx0, tx0))
            * (jnp.maximum(sy1, ty1) - jnp.minimum(sy0, ty0)))
    giou_p = iou - (hull - union) * pl.reciprocal(hull, approx=True)

    cost = cost_bbox * c_l1 + cost_class * c_cls + cost_giou * (-giou_p)             # (B,Tp,Qp)
    cost = cost + (1.0 - valid_q) * _BIG           # never select padded queries

    # ---- greedy assignment, unrolled over targets, entirely in vregs ----
    # TODO(synk): greedy per-target argmin, not exact Hungarian assignment (assumes T <= Q).
    t_iota = jax.lax.broadcasted_iota(jnp.int32, (1, Tp, 1), 1)
    A = jnp.zeros((B, Tp, Qp), f32)                # one-hot assignment matrix
    used = jnp.zeros((B, 1, Qp), f32)
    for t in range(Tp):
        vt = valid_t[:, t:t + 1, :]                               # (B,1,1)
        row = cost[:, t:t + 1, :] + used * _BIG                   # (B,1,Qp)
        mn = jnp.min(row, axis=2, keepdims=True)                  # (B,1,1)
        cand = jnp.where(row <= mn, q_iota, float(Qp))
        amin = jnp.min(cand, axis=2, keepdims=True)               # first argmin
        sel = (q_iota == amin).astype(f32) * vt                   # (B,1,Qp)
        used = jnp.maximum(used, sel)
        A = A + jnp.where(t_iota == t, sel, 0.0)

    mask_q = jnp.sum(A, axis=1, keepdims=True)                    # (B,1,Qp) matched queries
    num_boxes = jnp.maximum(_sum3(valid_t), 1.0)                  # (1,1,1)

    # ---- loss_labels: weighted cross-entropy over all real queries ----
    matched_cls = jnp.sum(A * label_val, axis=1, keepdims=True)               # (B,1,Qp)
    tgt_q = matched_cls + (1.0 - mask_q) * float(num_classes)                 # (B,1,Qp)
    classes_f = jax.lax.broadcasted_iota(jnp.int32, (B, C1, Qp), 1).astype(f32)
    onehot_q = (classes_f == tgt_q).astype(f32)
    tgt_logit = jnp.sum(onehot_q * logits, axis=1, keepdims=True)             # (B,1,Qp)
    nll = logit_max + jnp.log(sum_e) - tgt_logit                              # exact LSE
    wt = valid_q * jnp.where(tgt_q == float(num_classes), eos_coef, 1.0)
    loss_ce = _sum3(wt * nll) / _sum3(wt)

    # ---- class_error (first-max argmax, matches torch.argmax) ----
    amax = jnp.min(jnp.where(logits >= logit_max, classes_f, float(C1)),
                   axis=1, keepdims=True)                                     # (B,1,Qp)
    correct = (amax == tgt_q).astype(f32) * mask_q
    cerr = 100.0 - 100.0 * _sum3(correct) / jnp.maximum(_sum3(mask_q), 1.0)

    # ---- cardinality error ----
    non_empty = (amax != float(C1 - 1)).astype(f32) * valid_q
    card_pred = jnp.sum(non_empty, axis=2, keepdims=True)         # (B,1,1)
    tlen = jnp.sum(valid_t, axis=1, keepdims=True)                # (B,1,1)
    card = _sum3(jnp.abs(card_pred - tlen)) * (1.0 / float(B))

    # ---- loss_boxes: matched pairs via the assignment matrix (exact divides) ----
    msrc = []
    l1 = jnp.zeros((B, Tp, 1), f32)
    for c in range(4):
        sc = jnp.sum(A * pb[:, c:c + 1, :], axis=2, keepdims=True)   # (B,Tp,1)
        msrc.append(sc)
        l1 = l1 + jnp.abs(sc - tb[:, :, c:c + 1])
    loss_bbox = _sum3(l1 * valid_t) / num_boxes

    mcx, mcy, mw, mh = msrc
    px0, py0, px1, py1 = mcx - 0.5 * mw, mcy - 0.5 * mh, mcx + 0.5 * mw, mcy + 0.5 * mh
    a_s = (px1 - px0) * (py1 - py0)
    iw2 = jnp.maximum(jnp.minimum(px1, tx1) - jnp.maximum(px0, tx0), 0.0)
    ih2 = jnp.maximum(jnp.minimum(py1, ty1) - jnp.maximum(py0, ty0), 0.0)
    inter2 = iw2 * ih2
    union2 = a_s + area_t - inter2
    iou2 = inter2 / jnp.maximum(union2, 1e-12)
    hull2 = ((jnp.maximum(px1, tx1) - jnp.minimum(px0, tx0))
             * (jnp.maximum(py1, ty1) - jnp.minimum(py0, ty0)))
    giou2 = iou2 - (hull2 - union2) / jnp.maximum(hull2, 1e-12)
    loss_giou = _sum3((1.0 - giou2) * valid_t) / num_boxes

    # ---- pack the five scalars into one small store ----
    lane_i = jax.lax.broadcasted_iota(jnp.int32, (1, 1, 8), 2)
    outv = jnp.zeros((1, 1, 8), f32)
    for i, v in enumerate((loss_ce, cerr, card, loss_bbox, loss_giou)):
        outv = outv + jnp.where(lane_i == i, v, 0.0)
    out_ref[...] = outv


def detr_criterion(logits_t, boxes_t, onehot_tc, tboxes_p, *, num_classes, eos_coef, num_queries):
    L, B, C1, Qp = logits_t.shape
    Tp = onehot_tc.shape[1]
    kernel = functools.partial(
        _detr_criterion_kernel,
        num_classes=num_classes, eos_coef=float(eos_coef), num_queries=num_queries,
        cost_class=COST_CLASS, cost_bbox=COST_BBOX, cost_giou=COST_GIOU)
    return pl.pallas_call(
        kernel,
        out_shape=jax.ShapeDtypeStruct((L, 1, 1, 8), jnp.float32),
        grid=(L,),
        in_specs=[
            pl.BlockSpec((None, B, C1, Qp), lambda l: (l, 0, 0, 0)),
            pl.BlockSpec((None, B, 4, Qp), lambda l: (l, 0, 0, 0)),
            pl.BlockSpec((B, Tp, C1), lambda l: (0, 0, 0)),
            pl.BlockSpec((B, Tp, 4), lambda l: (0, 0, 0)),
        ],
        out_specs=pl.BlockSpec((None, 1, 1, 8), lambda l: (l, 0, 0, 0)),
        # One layer per grid step; "parallel" lets v7x's two TensorCores split the
        # layers. For real DETR shapes (B>=32, Q=100..300, C1~92) add a batch grid
        # axis and/or raise vmem_limit_bytes to respect v7x's smaller VMEM.
        compiler_params=pltpu.CompilerParams(dimension_semantics=("parallel",)),
    )(logits_t, boxes_t, onehot_tc, tboxes_p)


# ---------------------------------------------------------------------------
# Device-side criterion: pad / transpose to lane-dense layouts, one fused call.
# ---------------------------------------------------------------------------
@functools.partial(jax.jit, static_argnames=("num_classes", "eos_coef"))
def _criterion_device(all_logits, all_boxes, tgt_labels, tgt_boxes, *, num_classes, eos_coef):
    L, B, Q, C1 = all_logits.shape
    T = tgt_labels.shape[1]
    Qp = max(_round_up(Q, 128), 128)
    Tp = max(_round_up(T, 8), 8)

    # queries lane-dense, padded with zeros (logits) / 0.5 (boxes)
    logits_t = jnp.transpose(all_logits, (0, 1, 3, 2))                       # (L,B,C1,Q)
    logits_t = jnp.pad(logits_t, ((0, 0), (0, 0), (0, 0), (0, Qp - Q)))      # (L,B,C1,Qp)
    boxes_t = jnp.transpose(all_boxes, (0, 1, 3, 2))                         # (L,B,4,Q)
    boxes_t = jnp.pad(boxes_t, ((0, 0), (0, 0), (0, 0), (0, Qp - Q)),
                      constant_values=0.5)                                   # (L,B,4,Qp)

    # target one-hot (padded rows all-zero => encodes per-image target validity)
    labels_p = jnp.pad(tgt_labels, ((0, 0), (0, Tp - T)), constant_values=-1)
    onehot_tc = (labels_p[:, :, None] ==
                 jnp.arange(C1, dtype=jnp.int32)[None, None, :]).astype(jnp.float32)
    tboxes_p = jnp.pad(tgt_boxes, ((0, 0), (0, Tp - T), (0, 0)), constant_values=0.5)

    out = detr_criterion(logits_t, boxes_t, onehot_tc, tboxes_p,
                         num_classes=num_classes, eos_coef=eos_coef, num_queries=Q)
    res = out[:, 0, 0, :]                                                    # (L, 8)
    return {
        "loss_ce": res[:, 0],
        "class_error": res[:, 1],
        "cardinality_error": res[:, 2],
        "loss_bbox": res[:, 3],
        "loss_giou": res[:, 4],
    }


# ---------------------------------------------------------------------------
# SetCriterion.forward
# ---------------------------------------------------------------------------
def set_criterion_forward(outputs, targets, num_classes=NUM_CLASSES, eos_coef=EOS_COEF):
    logits_list = [outputs["pred_logits"]]
    boxes_list = [outputs["pred_boxes"]]
    for aux in outputs.get("aux_outputs", []):
        logits_list.append(aux["pred_logits"])
        boxes_list.append(aux["pred_boxes"])
    all_logits = jnp.stack(logits_list).astype(jnp.float32)      # (L, B, Q, C1)
    all_boxes = jnp.stack(boxes_list).astype(jnp.float32)        # (L, B, Q, 4)
    tgt_labels = jnp.stack([t["labels"] for t in targets]).astype(jnp.int32)   # (B, T)
    tgt_boxes = jnp.stack([t["boxes"] for t in targets]).astype(jnp.float32)   # (B, T, 4)

    res = _criterion_device(all_logits, all_boxes, tgt_labels, tgt_boxes,
                            num_classes=num_classes, eos_coef=float(eos_coef))

    L = all_logits.shape[0]
    losses = {
        "loss_ce": res["loss_ce"][0],
        "class_error": res["class_error"][0],
        "loss_bbox": res["loss_bbox"][0],
        "loss_giou": res["loss_giou"][0],
        "cardinality_error": res["cardinality_error"][0],
    }
    for i in range(L - 1):                      # aux layers, log=False (no class_error)
        layer = i + 1
        losses[f"loss_ce_{i}"] = res["loss_ce"][layer]
        losses[f"loss_bbox_{i}"] = res["loss_bbox"][layer]
        losses[f"loss_giou_{i}"] = res["loss_giou"][layer]
        losses[f"cardinality_error_{i}"] = res["cardinality_error"][layer]
    return losses


# ---------------------------------------------------------------------------
if __name__ == "__main__":
    key = jax.random.PRNGKey(0)
    k1, k2, k3, k4, k5, k6 = jax.random.split(key, 6)

    B, Q, T = 2, 8, 3
    C1 = NUM_CLASSES + 1

    def rand_boxes(k, prefix_shape):
        kc, ks = jax.random.split(k)
        cxy = jax.random.uniform(kc, prefix_shape + (2,), minval=0.25, maxval=0.75)
        wh = jax.random.uniform(ks, prefix_shape + (2,), minval=0.10, maxval=0.40)
        return jnp.concatenate([cxy, wh], axis=-1).astype(jnp.float32)

    outputs = {
        "pred_logits": jax.random.normal(k1, (B, Q, C1), jnp.float32),
        "pred_boxes": rand_boxes(k2, (B, Q)),
        "aux_outputs": [{
            "pred_logits": jax.random.normal(k3, (B, Q, C1), jnp.float32),
            "pred_boxes": rand_boxes(k4, (B, Q)),
        }],
    }
    labels = jax.random.randint(k5, (B, T), 0, NUM_CLASSES).astype(jnp.int32)
    boxes = rand_boxes(k6, (B, T))
    targets = [{"labels": labels[b], "boxes": boxes[b]} for b in range(B)]

    losses = set_criterion_forward(outputs, targets)
    jax.block_until_ready(list(losses.values()))
    print("KERNEL_OK")
</pallas_src>

<mosaic_0001>
module attributes {stable_mosaic.version = 11 : i64} {
  func.func @_detr_criterion_kernel(%arg0: i32, %arg1: memref<1x2x5x128xf32, #tpu.memory_space<vmem>>, %arg2: memref<1x2x4x128xf32, #tpu.memory_space<vmem>>, %arg3: memref<2x8x5xf32, #tpu.memory_space<vmem>>, %arg4: memref<2x8x4xf32, #tpu.memory_space<vmem>>, %arg5: memref<1x1x1x8xf32, #tpu.memory_space<vmem>>) attributes {dimension_semantics = [#tpu.dimension_semantics<parallel>], iteration_bounds = array<i64: 2>, scalar_prefetch = 0 : i64, scratch_operands = 0 : i64, tpu.core_type = #tpu.core_type<tc>, window_params = [{transform_indices = @transform_0, window_bounds = array<i64: 1, 2, 5, 128>}, {transform_indices = @transform_1, window_bounds = array<i64: 1, 2, 4, 128>}, {pipeline_mode = #tpu.pipeline_mode<synchronous>, transform_indices = @transform_2, window_bounds = array<i64: 2, 8, 5>}, {pipeline_mode = #tpu.pipeline_mode<synchronous>, transform_indices = @transform_3, window_bounds = array<i64: 2, 8, 4>}, {transform_indices = @transform_4, window_bounds = array<i64: 1, 1, 1, 8>}]} {
    %c0 = arith.constant 0 : index
    %c0_0 = arith.constant 0 : index
    %c0_1 = arith.constant 0 : index
    %c0_2 = arith.constant 0 : index
    %0 = vector.load %arg1[%c0, %c0_0, %c0_1, %c0_2] : memref<1x2x5x128xf32, #tpu.memory_space<vmem>>, vector<1x2x5x128xf32>
    %1 = vector.shape_cast %0 : vector<1x2x5x128xf32> to vector<2x5x128xf32>
    %c0_3 = arith.constant 0 : index
    %c0_4 = arith.constant 0 : index
    %c0_5 = arith.constant 0 : index
    %c0_6 = arith.constant 0 : index
    %2 = vector.load %arg2[%c0_3, %c0_4, %c0_5, %c0_6] : memref<1x2x4x128xf32, #tpu.memory_space<vmem>>, vector<1x2x4x128xf32>
    %3 = vector.shape_cast %2 : vector<1x2x4x128xf32> to vector<2x4x128xf32>
    %c0_7 = arith.constant 0 : index
    %c0_8 = arith.constant 0 : index
    %c0_9 = arith.constant 0 : index
    %4 = vector.load %arg3[%c0_7, %c0_8, %c0_9] : memref<2x8x5xf32, #tpu.memory_space<vmem>>, vector<2x8x5xf32>
    %c0_10 = arith.constant 0 : index
    %c0_11 = arith.constant 0 : index
    %c0_12 = arith.constant 0 : index
    %5 = vector.load %arg4[%c0_10, %c0_11, %c0_12] : memref<2x8x4xf32, #tpu.memory_space<vmem>>, vector<2x8x4xf32>
    %cst = arith.constant dense<0xFF800000> : vector<2x128xf32>
    %6 = vector.multi_reduction <maximumf>, %1, %cst [1] : vector<2x5x128xf32> to vector<2x128xf32>
    %7 = vector.shape_cast %6 : vector<2x128xf32> to vector<2x1x128xf32>
    %8 = vector.broadcast %7 : vector<2x1x128xf32> to vector<2x5x128xf32>
    %9 = arith.subf %1, %8 : vector<2x5x128xf32>
    %10 = math.exp %9 : vector<2x5x128xf32>
    %cst_13 = arith.constant dense<0.000000e+00> : vector<2x128xf32>
    %11 = vector.multi_reduction <add>, %10, %cst_13 [1] : vector<2x5x128xf32> to vector<2x128xf32>
    %12 = vector.shape_cast %11 : vector<2x128xf32> to vector<2x1x128xf32>
    %13 = tpu.reciprocal %12 {approx = true} : vector<2x1x128xf32> -> vector<2x1x128xf32>
    %14 = vector.broadcast %13 : vector<2x1x128xf32> to vector<2x5x128xf32>
    %15 = arith.mulf %10, %14 : vector<2x5x128xf32>
    %16 = tpu.iota {dimensions = array<i32: 2>} : vector<1x1x128xi32>
    %17 = arith.sitofp %16 : vector<1x1x128xi32> to vector<1x1x128xf32>
    %c8_i32 = arith.constant 8 : i32
    %18 = vector.broadcast %c8_i32 : i32 to vector<1x1x128xi32>
    %19 = arith.cmpi slt, %16, %18 : vector<1x1x128xi32>
    %20 = arith.extui %19 : vector<1x1x128xi1> to vector<1x1x128xi32>
    %21 = arith.sitofp %20 : vector<1x1x128xi32> to vector<1x1x128xf32>
    %cst_14 = arith.constant dense<0.000000e+00> : vector<2x8xf32>
    %22 = vector.multi_reduction <add>, %4, %cst_14 [2] : vector<2x8x5xf32> to vector<2x8xf32>
    %23 = vector.shape_cast %22 : vector<2x8xf32> to vector<2x8x1xf32>
    %24 = tpu.iota {dimensions = array<i32: 2>} : vector<1x1x5xi32>
    %25 = arith.sitofp %24 : vector<1x1x5xi32> to vector<1x1x5xf32>
    %26 = vector.broadcast %25 : vector<1x1x5xf32> to vector<2x8x5xf32>
    %27 = arith.mulf %4, %26 : vector<2x8x5xf32>
    %cst_15 = arith.constant dense<0.000000e+00> : vector<2x8xf32>
    %28 = vector.multi_reduction <add>, %27, %cst_15 [2] : vector<2x8x5xf32> to vector<2x8xf32>
    %29 = vector.shape_cast %28 : vector<2x8xf32> to vector<2x8x1xf32>
    %cst_16 = arith.constant 0.000000e+00 : f32
    %30 = vector.broadcast %cst_16 : f32 to vector<2x8x128xf32>
    %31 = vector.extract_strided_slice %4 {offsets = [0, 0, 0], sizes = [2, 8, 1], strides = [1, 1, 1]} : vector<2x8x5xf32> to vector<2x8x1xf32>
    %32 = vector.extract_strided_slice %15 {offsets = [0, 0, 0], sizes = [2, 1, 128], strides = [1, 1, 1]} : vector<2x5x128xf32> to vector<2x1x128xf32>
    %33 = vector.broadcast %31 : vector<2x8x1xf32> to vector<2x8x128xf32>
    %34 = vector.broadcast %32 : vector<2x1x128xf32> to vector<2x8x128xf32>
    %35 = arith.mulf %33, %34 : vector<2x8x128xf32>
    %36 = arith.addf %30, %35 : vector<2x8x128xf32>
    %37 = vector.extract_strided_slice %4 {offsets = [0, 0, 1], sizes = [2, 8, 1], strides = [1, 1, 1]} : vector<2x8x5xf32> to vector<2x8x1xf32>
    %38 = vector.extract_strided_slice %15 {offsets = [0, 1, 0], sizes = [2, 1, 128], strides = [1, 1, 1]} : vector<2x5x128xf32> to vector<2x1x128xf32>
    %39 = vector.broadcast %37 : vector<2x8x1xf32> to vector<2x8x128xf32>
    %40 = vector.broadcast %38 : vector<2x1x128xf32> to vector<2x8x128xf32>
    %41 = arith.mulf %39, %40 : vector<2x8x128xf32>
    %42 = arith.addf %36, %41 : vector<2x8x128xf32>
    %43 = vector.extract_strided_slice %4 {offsets = [0, 0, 2], sizes = [2, 8, 1], strides = [1, 1, 1]} : vector<2x8x5xf32> to vector<2x8x1xf32>
    %44 = vector.extract_strided_slice %15 {offsets = [0, 2, 0], sizes = [2, 1, 128], strides = [1, 1, 1]} : vector<2x5x128xf32> to vector<2x1x128xf32>
    %45 = vector.broadcast %43 : vector<2x8x1xf32> to vector<2x8x128xf32>
    %46 = vector.broadcast %44 : vector<2x1x128xf32> to vector<2x8x128xf32>
    %47 = arith.mulf %45, %46 : vector<2x8x128xf32>
    %48 = arith.addf %42, %47 : vector<2x8x128xf32>
    %49 = vector.extract_strided_slice %4 {offsets = [0, 0, 3], sizes = [2, 8, 1], strides = [1, 1, 1]} : vector<2x8x5xf32> to vector<2x8x1xf32>
    %50 = vector.extract_strided_slice %15 {offsets = [0, 3, 0], sizes = [2, 1, 128], strides = [1, 1, 1]} : vector<2x5x128xf32> to vector<2x1x128xf32>
    %51 = vector.broadcast %49 : vector<2x8x1xf32> to vector<2x8x128xf32>
    %52 = vector.broadcast %50 : vector<2x1x128xf32> to vector<2x8x128xf32>
    %53 = arith.mulf %51, %52 : vector<2x8x128xf32>
    %54 = arith.addf %48, %53 : vector<2x8x128xf32>
    %55 = vector.extract_strided_slice %4 {offsets = [0, 0, 4], sizes = [2, 8, 1], strides = [1, 1, 1]} : vector<2x8x5xf32> to vector<2x8x1xf32>
    %56 = vector.extract_strided_slice %15 {offsets = [0, 4, 0], sizes = [2, 1, 128], strides = [1, 1, 1]} : vector<2x5x128xf32> to vector<2x1x128xf32>
    %57 = vector.broadcast %55 : vector<2x8x1xf32> to vector<2x8x128xf32>
    %58 = vector.broadcast %56 : vector<2x1x128xf32> to vector<2x8x128xf32>
    %59 = arith.mulf %57, %58 : vector<2x8x128xf32>
    %60 = arith.addf %54, %59 : vector<2x8x128xf32>
    %cst_17 = arith.constant 0.000000e+00 : f32
    %61 = vector.broadcast %cst_17 : f32 to vector<2x8x128xf32>
    %62 = arith.subf %61, %60 : vector<2x8x128xf32>
    %63 = vector.extract_strided_slice %3 {offsets = [0, 0, 0], sizes = [2, 1, 128], strides = [1, 1, 1]} : vector<2x4x128xf32> to vector<2x1x128xf32>
    %64 = vector.extract_strided_slice %3 {offsets = [0, 1, 0], sizes = [2, 1, 128], strides = [1, 1, 1]} : vector<2x4x128xf32> to vector<2x1x128xf32>
    %65 = vector.extract_strided_slice %3 {offsets = [0, 2, 0], sizes = [2, 1, 128], strides = [1, 1, 1]} : vector<2x4x128xf32> to vector<2x1x128xf32>
    %66 = vector.extract_strided_slice %3 {offsets = [0, 3, 0], sizes = [2, 1, 128], strides = [1, 1, 1]} : vector<2x4x128xf32> to vector<2x1x128xf32>
    %67 = vector.extract_strided_slice %5 {offsets = [0, 0, 0], sizes = [2, 8, 1], strides = [1, 1, 1]} : vector<2x8x4xf32> to vector<2x8x1xf32>
    %68 = vector.extract_strided_slice %5 {offsets = [0, 0, 1], sizes = [2, 8, 1], strides = [1, 1, 1]} : vector<2x8x4xf32> to vector<2x8x1xf32>
    %69 = vector.extract_strided_slice %5 {offsets = [0, 0, 2], sizes = [2, 8, 1], strides = [1, 1, 1]} : vector<2x8x4xf32> to vector<2x8x1xf32>
    %70 = vector.extract_strided_slice %5 {offsets = [0, 0, 3], sizes = [2, 8, 1], strides = [1, 1, 1]} : vector<2x8x4xf32> to vector<2x8x1xf32>
    %71 = vector.broadcast %67 : vector<2x8x1xf32> to vector<2x8x128xf32>
    %72 = vector.broadcast %63 : vector<2x1x128xf32> to vector<2x8x128xf32>
    %73 = arith.subf %71, %72 : vector<2x8x128xf32>
    %74 = math.absf %73 : vector<2x8x128xf32>
    %75 = vector.broadcast %68 : vector<2x8x1xf32> to vector<2x8x128xf32>
    %76 = vector.broadcast %64 : vector<2x1x128xf32> to vector<2x8x128xf32>
    %77 = arith.subf %75, %76 : vector<2x8x128xf32>
    %78 = math.absf %77 : vector<2x8x128xf32>
    %79 = arith.addf %74, %78 : vector<2x8x128xf32>
    %80 = vector.broadcast %69 : vector<2x8x1xf32> to vector<2x8x128xf32>
    %81 = vector.broadcast %65 : vector<2x1x128xf32> to vector<2x8x128xf32>
    %82 = arith.subf %80, %81 : vector<2x8x128xf32>
    %83 = math.absf %82 : vector<2x8x128xf32>
    %84 = arith.addf %79, %83 : vector<2x8x128xf32>
    %85 = vector.broadcast %70 : vector<2x8x1xf32> to vector<2x8x128xf32>
    %86 = vector.broadcast %66 : vector<2x1x128xf32> to vector<2x8x128xf32>
    %87 = arith.subf %85, %86 : vector<2x8x128xf32>
    %88 = math.absf %87 : vector<2x8x128xf32>
    %89 = arith.addf %84, %88 : vector<2x8x128xf32>
    %cst_18 = arith.constant 5.000000e-01 : f32
    %90 = vector.broadcast %cst_18 : f32 to vector<2x1x128xf32>
    %91 = arith.mulf %90, %65 : vector<2x1x128xf32>
    %92 = arith.subf %63, %91 : vector<2x1x128xf32>
    %cst_19 = arith.constant 5.000000e-01 : f32
    %93 = vector.broadcast %cst_19 : f32 to vector<2x1x128xf32>
    %94 = arith.mulf %93, %66 : vector<2x1x128xf32>
    %95 = arith.subf %64, %94 : vector<2x1x128xf32>
    %cst_20 = arith.constant 5.000000e-01 : f32
    %96 = vector.broadcast %cst_20 : f32 to vector<2x1x128xf32>
    %97 = arith.mulf %96, %65 : vector<2x1x128xf32>
    %98 = arith.addf %63, %97 : vector<2x1x128xf32>
    %cst_21 = arith.constant 5.000000e-01 : f32
    %99 = vector.broadcast %cst_21 : f32 to vector<2x1x128xf32>
    %100 = arith.mulf %99, %66 : vector<2x1x128xf32>
    %101 = arith.addf %64, %100 : vector<2x1x128xf32>
    %cst_22 = arith.constant 5.000000e-01 : f32
    %102 = vector.broadcast %cst_22 : f32 to vector<2x8x1xf32>
    %103 = arith.mulf %102, %69 : vector<2x8x1xf32>
    %104 = arith.subf %67, %103 : vector<2x8x1xf32>
    %cst_23 = arith.constant 5.000000e-01 : f32
    %105 = vector.broadcast %cst_23 : f32 to vector<2x8x1xf32>
    %106 = arith.mulf %105, %70 : vector<2x8x1xf32>
    %107 = arith.subf %68, %106 : vector<2x8x1xf32>
    %cst_24 = arith.constant 5.000000e-01 : f32
    %108 = vector.broadcast %cst_24 : f32 to vector<2x8x1xf32>
    %109 = arith.mulf %108, %69 : vector<2x8x1xf32>
    %110 = arith.addf %67, %109 : vector<2x8x1xf32>
    %cst_25 = arith.constant 5.000000e-01 : f32
    %111 = vector.broadcast %cst_25 : f32 to vector<2x8x1xf32>
    %112 = arith.mulf %111, %70 : vector<2x8x1xf32>
    %113 = arith.addf %68, %112 : vector<2x8x1xf32>
    %114 = arith.subf %98, %92 : vector<2x1x128xf32>
    %115 = arith.subf %101, %95 : vector<2x1x128xf32>
    %116 = arith.mulf %114, %115 : vector<2x1x128xf32>
    %117 = arith.subf %110, %104 : vector<2x8x1xf32>
    %118 = arith.subf %113, %107 : vector<2x8x1xf32>
    %119 = arith.mulf %117, %118 : vector<2x8x1xf32>
    %120 = vector.broadcast %98 : vector<2x1x128xf32> to vector<2x8x128xf32>
    %121 = vector.broadcast %110 : vector<2x8x1xf32> to vector<2x8x128xf32>
    %122 = arith.minimumf %120, %121 : vector<2x8x128xf32>
    %123 = vector.broadcast %92 : vector<2x1x128xf32> to vector<2x8x128xf32>
    %124 = vector.broadcast %104 : vector<2x8x1xf32> to vector<2x8x128xf32>
    %125 = arith.maximumf %123, %124 : vector<2x8x128xf32>
    %126 = arith.subf %122, %125 : vector<2x8x128xf32>
    %cst_26 = arith.constant 0.000000e+00 : f32
    %127 = vector.broadcast %cst_26 : f32 to vector<2x8x128xf32>
    %128 = arith.maximumf %126, %127 : vector<2x8x128xf32>
    %129 = vector.broadcast %101 : vector<2x1x128xf32> to vector<2x8x128xf32>
    %130 = vector.broadcast %113 : vector<2x8x1xf32> to vector<2x8x128xf32>
    %131 = arith.minimumf %129, %130 : vector<2x8x128xf32>
    %132 = vector.broadcast %95 : vector<2x1x128xf32> to vector<2x8x128xf32>
    %133 = vector.broadcast %107 : vector<2x8x1xf32> to vector<2x8x128xf32>
    %134 = arith.maximumf %132, %133 : vector<2x8x128xf32>
    %135 = arith.subf %131, %134 : vector<2x8x128xf32>
    %cst_27 = arith.constant 0.000000e+00 : f32
    %136 = vector.broadcast %cst_27 : f32 to vector<2x8x128xf32>
    %137 = arith.maximumf %135, %136 : vector<2x8x128xf32>
    %138 = arith.mulf %128, %137 : vector<2x8x128xf32>
    %139 = vector.broadcast %116 : vector<2x1x128xf32> to vector<2x8x128xf32>
    %140 = vector.broadcast %119 : vector<2x8x1xf32> to vector<2x8x128xf32>
    %141 = arith.addf %139, %140 : vector<2x8x128xf32>
    %142 = arith.subf %141, %138 : vector<2x8x128xf32>
    %143 = tpu.reciprocal %142 {approx = true} : vector<2x8x128xf32> -> vector<2x8x128xf32>
    %144 = arith.mulf %138, %143 : vector<2x8x128xf32>
    %145 = vector.broadcast %98 : vector<2x1x128xf32> to vector<2x8x128xf32>
    %146 = vector.broadcast %110 : vector<2x8x1xf32> to vector<2x8x128xf32>
    %147 = arith.maximumf %145, %146 : vector<2x8x128xf32>
    %148 = vector.broadcast %92 : vector<2x1x128xf32> to vector<2x8x128xf32>
    %149 = vector.broadcast %104 : vector<2x8x1xf32> to vector<2x8x128xf32>
    %150 = arith.minimumf %148, %149 : vector<2x8x128xf32>
    %151 = arith.subf %147, %150 : vector<2x8x128xf32>
    %152 = vector.broadcast %101 : vector<2x1x128xf32> to vector<2x8x128xf32>
    %153 = vector.broadcast %113 : vector<2x8x1xf32> to vector<2x8x128xf32>
    %154 = arith.maximumf %152, %153 : vector<2x8x128xf32>
    %155 = vector.broadcast %95 : vector<2x1x128xf32> to vector<2x8x128xf32>
    %156 = vector.broadcast %107 : vector<2x8x1xf32> to vector<2x8x128xf32>
    %157 = arith.minimumf %155, %156 : vector<2x8x128xf32>
    %158 = arith.subf %154, %157 : vector<2x8x128xf32>
    %159 = arith.mulf %151, %158 : vector<2x8x128xf32>
    %160 = arith.subf %159, %142 : vector<2x8x128xf32>
    %161 = tpu.reciprocal %159 {approx = true} : vector<2x8x128xf32> -> vector<2x8x128xf32>
    %162 = arith.mulf %160, %161 : vector<2x8x128xf32>
    %163 = arith.subf %144, %162 : vector<2x8x128xf32>
    %cst_28 = arith.constant 5.000000e+00 : f32
    %164 = vector.broadcast %cst_28 : f32 to vector<2x8x128xf32>
    %165 = arith.mulf %164, %89 : vector<2x8x128xf32>
    %cst_29 = arith.constant 1.000000e+00 : f32
    %166 = vector.broadcast %cst_29 : f32 to vector<2x8x128xf32>
    %167 = arith.mulf %166, %62 : vector<2x8x128xf32>
    %168 = arith.addf %165, %167 : vector<2x8x128xf32>
    %cst_30 = arith.constant 0.000000e+00 : f32
    %169 = vector.broadcast %cst_30 : f32 to vector<2x8x128xf32>
    %170 = arith.subf %169, %163 : vector<2x8x128xf32>
    %cst_31 = arith.constant 2.000000e+00 : f32
    %171 = vector.broadcast %cst_31 : f32 to vector<2x8x128xf32>
    %172 = arith.mulf %171, %170 : vector<2x8x128xf32>
    %173 = arith.addf %168, %172 : vector<2x8x128xf32>
    %cst_32 = arith.constant 1.000000e+00 : f32
    %174 = vector.broadcast %cst_32 : f32 to vector<1x1x128xf32>
    %175 = arith.subf %174, %21 : vector<1x1x128xf32>
    %cst_33 = arith.constant 1.000000e+09 : f32
    %176 = vector.broadcast %cst_33 : f32 to vector<1x1x128xf32>
    %177 = arith.mulf %175, %176 : vector<1x1x128xf32>
    %178 = vector.broadcast %177 : vector<1x1x128xf32> to vector<2x8x128xf32>
    %179 = arith.addf %173, %178 : vector<2x8x128xf32>
    %180 = tpu.iota {dimensions = array<i32: 1>} : vector<1x8x1xi32>
    %cst_34 = arith.constant 0.000000e+00 : f32
    %181 = vector.broadcast %cst_34 : f32 to vector<2x8x128xf32>
    %cst_35 = arith.constant 0.000000e+00 : f32
    %182 = vector.broadcast %cst_35 : f32 to vector<2x1x128xf32>
    %183 = vector.extract_strided_slice %23 {offsets = [0, 0, 0], sizes = [2, 1, 1], strides = [1, 1, 1]} : vector<2x8x1xf32> to vector<2x1x1xf32>
    %184 = vector.extract_strided_slice %179 {offsets = [0, 0, 0], sizes = [2, 1, 128], strides = [1, 1, 1]} : vector<2x8x128xf32> to vector<2x1x128xf32>
    %cst_36 = arith.constant 1.000000e+09 : f32
    %185 = vector.broadcast %cst_36 : f32 to vector<2x1x128xf32>
    %186 = arith.mulf %182, %185 : vector<2x1x128xf32>
    %187 = arith.addf %184, %186 : vector<2x1x128xf32>
    %cst_37 = arith.constant dense<0x7F800000> : vector<2x1xf32>
    %188 = vector.multi_reduction <minimumf>, %187, %cst_37 [2] : vector<2x1x128xf32> to vector<2x1xf32>
    %189 = vector.shape_cast %188 : vector<2x1xf32> to vector<2x1x1xf32>
    %190 = vector.broadcast %189 : vector<2x1x1xf32> to vector<2x1x128xf32>
    %191 = arith.cmpf ole, %187, %190 : vector<2x1x128xf32>
    %cst_38 = arith.constant 1.280000e+02 : f32
    %192 = vector.shape_cast %17 : vector<1x1x128xf32> to vector<1x1x128xf32>
    %193 = vector.broadcast %192 : vector<1x1x128xf32> to vector<2x1x128xf32>
    %194 = vector.broadcast %cst_38 : f32 to vector<2x1x128xf32>
    %195 = arith.select %191, %193, %194 : vector<2x1x128xi1>, vector<2x1x128xf32>
    %cst_39 = arith.constant dense<0x7F800000> : vector<2x1xf32>
    %196 = vector.multi_reduction <minimumf>, %195, %cst_39 [2] : vector<2x1x128xf32> to vector<2x1xf32>
    %197 = vector.shape_cast %196 : vector<2x1xf32> to vector<2x1x1xf32>
    %198 = vector.broadcast %17 : vector<1x1x128xf32> to vector<2x1x128xf32>
    %199 = vector.broadcast %197 : vector<2x1x1xf32> to vector<2x1x128xf32>
    %200 = arith.cmpf oeq, %198, %199 : vector<2x1x128xf32>
    %201 = arith.extui %200 : vector<2x1x128xi1> to vector<2x1x128xi32>
    %202 = arith.sitofp %201 : vector<2x1x128xi32> to vector<2x1x128xf32>
    %203 = vector.broadcast %183 : vector<2x1x1xf32> to vector<2x1x128xf32>
    %204 = arith.mulf %202, %203 : vector<2x1x128xf32>
    %205 = arith.maximumf %182, %204 : vector<2x1x128xf32>
    %c0_i32 = arith.constant 0 : i32
    %206 = vector.broadcast %c0_i32 : i32 to vector<1x8x1xi32>
    %207 = arith.cmpi eq, %180, %206 : vector<1x8x1xi32>
    %cst_40 = arith.constant 0.000000e+00 : f32
    %208 = vector.shape_cast %207 : vector<1x8x1xi1> to vector<1x8x1xi1>
    %209 = vector.broadcast %208 : vector<1x8x1xi1> to vector<2x8x128xi1>
    %210 = vector.shape_cast %204 : vector<2x1x128xf32> to vector<2x1x128xf32>
    %211 = vector.broadcast %210 : vector<2x1x128xf32> to vector<2x8x128xf32>
    %212 = vector.broadcast %cst_40 : f32 to vector<2x8x128xf32>
    %213 = arith.select %209, %211, %212 : vector<2x8x128xi1>, vector<2x8x128xf32>
    %214 = arith.addf %181, %213 : vector<2x8x128xf32>
    %215 = vector.extract_strided_slice %23 {offsets = [0, 1, 0], sizes = [2, 1, 1], strides = [1, 1, 1]} : vector<2x8x1xf32> to vector<2x1x1xf32>
    %216 = vector.extract_strided_slice %179 {offsets = [0, 1, 0], sizes = [2, 1, 128], strides = [1, 1, 1]} : vector<2x8x128xf32> to vector<2x1x128xf32>
    %cst_41 = arith.constant 1.000000e+09 : f32
    %217 = vector.broadcast %cst_41 : f32 to vector<2x1x128xf32>
    %218 = arith.mulf %205, %217 : vector<2x1x128xf32>
    %219 = arith.addf %216, %218 : vector<2x1x128xf32>
    %cst_42 = arith.constant dense<0x7F800000> : vector<2x1xf32>
    %220 = vector.multi_reduction <minimumf>, %219, %cst_42 [2] : vector<2x1x128xf32> to vector<2x1xf32>
    %221 = vector.shape_cast %220 : vector<2x1xf32> to vector<2x1x1xf32>
    %222 = vector.broadcast %221 : vector<2x1x1xf32> to vector<2x1x128xf32>
    %223 = arith.cmpf ole, %219, %222 : vector<2x1x128xf32>
    %cst_43 = arith.constant 1.280000e+02 : f32
    %224 = vector.shape_cast %17 : vector<1x1x128xf32> to vector<1x1x128xf32>
    %225 = vector.broadcast %224 : vector<1x1x128xf32> to vector<2x1x128xf32>
    %226 = vector.broadcast %cst_43 : f32 to vector<2x1x128xf32>
    %227 = arith.select %223, %225, %226 : vector<2x1x128xi1>, vector<2x1x128xf32>
    %cst_44 = arith.constant dense<0x7F800000> : vector<2x1xf32>
    %228 = vector.multi_reduction <minimumf>, %227, %cst_44 [2] : vector<2x1x128xf32> to vector<2x1xf32>
    %229 = vector.shape_cast %228 : vector<2x1xf32> to vector<2x1x1xf32>
    %230 = vector.broadcast %17 : vector<1x1x128xf32> to vector<2x1x128xf32>
    %231 = vector.broadcast %229 : vector<2x1x1xf32> to vector<2x1x128xf32>
    %232 = arith.cmpf oeq, %230, %231 : vector<2x1x128xf32>
    %233 = arith.extui %232 : vector<2x1x128xi1> to vector<2x1x128xi32>
    %234 = arith.sitofp %233 : vector<2x1x128xi32> to vector<2x1x128xf32>
    %235 = vector.broadcast %215 : vector<2x1x1xf32> to vector<2x1x128xf32>
    %236 = arith.mulf %234, %235 : vector<2x1x128xf32>
    %237 = arith.maximumf %205, %236 : vector<2x1x128xf32>
    %c1_i32 = arith.constant 1 : i32
    %238 = vector.broadcast %c1_i32 : i32 to vector<1x8x1xi32>
    %239 = arith.cmpi eq, %180, %238 : vector<1x8x1xi32>
    %cst_45 = arith.constant 0.000000e+00 : f32
    %240 = vector.shape_cast %239 : vector<1x8x1xi1> to vector<1x8x1xi1>
    %241 = vector.broadcast %240 : vector<1x8x1xi1> to vector<2x8x128xi1>
    %242 = vector.shape_cast %236 : vector<2x1x128xf32> to vector<2x1x128xf32>
    %243 = vector.broadcast %242 : vector<2x1x128xf32> to vector<2x8x128xf32>
    %244 = vector.broadcast %cst_45 : f32 to vector<2x8x128xf32>
    %245 = arith.select %241, %243, %244 : vector<2x8x128xi1>, vector<2x8x128xf32>
    %246 = arith.addf %214, %245 : vector<2x8x128xf32>
    %247 = vector.extract_strided_slice %23 {offsets = [0, 2, 0], sizes = [2, 1, 1], strides = [1, 1, 1]} : vector<2x8x1xf32> to vector<2x1x1xf32>
    %248 = vector.extract_strided_slice %179 {offsets = [0, 2, 0], sizes = [2, 1, 128], strides = [1, 1, 1]} : vector<2x8x128xf32> to vector<2x1x128xf32>
    %cst_46 = arith.constant 1.000000e+09 : f32
    %249 = vector.broadcast %cst_46 : f32 to vector<2x1x128xf32>
    %250 = arith.mulf %237, %249 : vector<2x1x128xf32>
    %251 = arith.addf %248, %250 : vector<2x1x128xf32>
    %cst_47 = arith.constant dense<0x7F800000> : vector<2x1xf32>
    %252 = vector.multi_reduction <minimumf>, %251, %cst_47 [2] : vector<2x1x128xf32> to vector<2x1xf32>
    %253 = vector.shape_cast %252 : vector<2x1xf32> to vector<2x1x1xf32>
    %254 = vector.broadcast %253 : vector<2x1x1xf32> to vector<2x1x128xf32>
    %255 = arith.cmpf ole, %251, %254 : vector<2x1x128xf32>
    %cst_48 = arith.constant 1.280000e+02 : f32
    %256 = vector.shape_cast %17 : vector<1x1x128xf32> to vector<1x1x128xf32>
    %257 = vector.broadcast %256 : vector<1x1x128xf32> to vector<2x1x128xf32>
    %258 = vector.broadcast %cst_48 : f32 to vector<2x1x128xf32>
    %259 = arith.select %255, %257, %258 : vector<2x1x128xi1>, vector<2x1x128xf32>
    %cst_49 = arith.constant dense<0x7F800000> : vector<2x1xf32>
    %260 = vector.multi_reduction <minimumf>, %259, %cst_49 [2] : vector<2x1x128xf32> to vector<2x1xf32>
    %261 = vector.shape_cast %260 : vector<2x1xf32> to vector<2x1x1xf32>
    %262 = vector.broadcast %17 : vector<1x1x128xf32> to vector<2x1x128xf32>
    %263 = vector.broadcast %261 : vector<2x1x1xf32> to vector<2x1x128xf32>
    %264 = arith.cmpf oeq, %262, %263 : vector<2x1x128xf32>
    %265 = arith.extui %264 : vector<2x1x128xi1> to vector<2x1x128xi32>
    %266 = arith.sitofp %265 : vector<2x1x128xi32> to vector<2x1x128xf32>
    %267 = vector.broadcast %247 : vector<2x1x1xf32> to vector<2x1x128xf32>
    %268 = arith.mulf %266, %267 : vector<2x1x128xf32>
    %269 = arith.maximumf %237, %268 : vector<2x1x128xf32>
    %c2_i32 = arith.constant 2 : i32
    %270 = vector.broadcast %c2_i32 : i32 to vector<1x8x1xi32>
    %271 = arith.cmpi eq, %180, %270 : vector<1x8x1xi32>
    %cst_50 = arith.constant 0.000000e+00 : f32
    %272 = vector.shape_cast %271 : vector<1x8x1xi1> to vector<1x8x1xi1>
    %273 = vector.broadcast %272 : vector<1x8x1xi1> to vector<2x8x128xi1>
    %274 = vector.shape_cast %268 : vector<2x1x128xf32> to vector<2x1x128xf32>
    %275 = vector.broadcast %274 : vector<2x1x128xf32> to vector<2x8x128xf32>
    %276 = vector.broadcast %cst_50 : f32 to vector<2x8x128xf32>
    %277 = arith.select %273, %275, %276 : vector<2x8x128xi1>, vector<2x8x128xf32>
    %278 = arith.addf %246, %277 : vector<2x8x128xf32>
    %279 = vector.extract_strided_slice %23 {offsets = [0, 3, 0], sizes = [2, 1, 1], strides = [1, 1, 1]} : vector<2x8x1xf32> to vector<2x1x1xf32>
    %280 = vector.extract_strided_slice %179 {offsets = [0, 3, 0], sizes = [2, 1, 128], strides = [1, 1, 1]} : vector<2x8x128xf32> to vector<2x1x128xf32>
    %cst_51 = arith.constant 1.000000e+09 : f32
    %281 = vector.broadcast %cst_51 : f32 to vector<2x1x128xf32>
    %282 = arith.mulf %269, %281 : vector<2x1x128xf32>
    %283 = arith.addf %280, %282 : vector<2x1x128xf32>
    %cst_52 = arith.constant dense<0x7F800000> : vector<2x1xf32>
    %284 = vector.multi_reduction <minimumf>, %283, %cst_52 [2] : vector<2x1x128xf32> to vector<2x1xf32>
    %285 = vector.shape_cast %284 : vector<2x1xf32> to vector<2x1x1xf32>
    %286 = vector.broadcast %285 : vector<2x1x1xf32> to vector<2x1x128xf32>
    %287 = arith.cmpf ole, %283, %286 : vector<2x1x128xf32>
    %cst_53 = arith.constant 1.280000e+02 : f32
    %288 = vector.shape_cast %17 : vector<1x1x128xf32> to vector<1x1x128xf32>
    %289 = vector.broadcast %288 : vector<1x1x128xf32> to vector<2x1x128xf32>
    %290 = vector.broadcast %cst_53 : f32 to vector<2x1x128xf32>
    %291 = arith.select %287, %289, %290 : vector<2x1x128xi1>, vector<2x1x128xf32>
    %cst_54 = arith.constant dense<0x7F800000> : vector<2x1xf32>
    %292 = vector.multi_reduction <minimumf>, %291, %cst_54 [2] : vector<2x1x128xf32> to vector<2x1xf32>
    %293 = vector.shape_cast %292 : vector<2x1xf32> to vector<2x1x1xf32>
    %294 = vector.broadcast %17 : vector<1x1x128xf32> to vector<2x1x128xf32>
    %295 = vector.broadcast %293 : vector<2x1x1xf32> to vector<2x1x128xf32>
    %296 = arith.cmpf oeq, %294, %295 : vector<2x1x128xf32>
    %297 = arith.extui %296 : vector<2x1x128xi1> to vector<2x1x128xi32>
    %298 = arith.sitofp %297 : vector<2x1x128xi32> to vector<2x1x128xf32>
    %299 = vector.broadcast %279 : vector<2x1x1xf32> to vector<2x1x128xf32>
    %300 = arith.mulf %298, %299 : vector<2x1x128xf32>
    %301 = arith.maximumf %269, %300 : vector<2x1x128xf32>
    %c3_i32 = arith.constant 3 : i32
    %302 = vector.broadcast %c3_i32 : i32 to vector<1x8x1xi32>
    %303 = arith.cmpi eq, %180, %302 : vector<1x8x1xi32>
    %cst_55 = arith.constant 0.000000e+00 : f32
    %304 = vector.shape_cast %303 : vector<1x8x1xi1> to vector<1x8x1xi1>
    %305 = vector.broadcast %304 : vector<1x8x1xi1> to vector<2x8x128xi1>
    %306 = vector.shape_cast %300 : vector<2x1x128xf32> to vector<2x1x128xf32>
    %307 = vector.broadcast %306 : vector<2x1x128xf32> to vector<2x8x128xf32>
    %308 = vector.broadcast %cst_55 : f32 to vector<2x8x128xf32>
    %309 = arith.select %305, %307, %308 : vector<2x8x128xi1>, vector<2x8x128xf32>
    %310 = arith.addf %278, %309 : vector<2x8x128xf32>
    %311 = vector.extract_strided_slice %23 {offsets = [0, 4, 0], sizes = [2, 1, 1], strides = [1, 1, 1]} : vector<2x8x1xf32> to vector<2x1x1xf32>
    %312 = vector.extract_strided_slice %179 {offsets = [0, 4, 0], sizes = [2, 1, 128], strides = [1, 1, 1]} : vector<2x8x128xf32> to vector<2x1x128xf32>
    %cst_56 = arith.constant 1.000000e+09 : f32
    %313 = vector.broadcast %cst_56 : f32 to vector<2x1x128xf32>
    %314 = arith.mulf %301, %313 : vector<2x1x128xf32>
    %315 = arith.addf %312, %314 : vector<2x1x128xf32>
    %cst_57 = arith.constant dense<0x7F800000> : vector<2x1xf32>
    %316 = vector.multi_reduction <minimumf>, %315, %cst_57 [2] : vector<2x1x128xf32> to vector<2x1xf32>
    %317 = vector.shape_cast %316 : vector<2x1xf32> to vector<2x1x1xf32>
    %318 = vector.broadcast %317 : vector<2x1x1xf32> to vector<2x1x128xf32>
    %319 = arith.cmpf ole, %315, %318 : vector<2x1x128xf32>
    %cst_58 = arith.constant 1.280000e+02 : f32
    %320 = vector.shape_cast %17 : vector<1x1x128xf32> to vector<1x1x128xf32>
    %321 = vector.broadcast %320 : vector<1x1x128xf32> to vector<2x1x128xf32>
    %322 = vector.broadcast %cst_58 : f32 to vector<2x1x128xf32>
    %323 = arith.select %319, %321, %322 : vector<2x1x128xi1>, vector<2x1x128xf32>
    %cst_59 = arith.constant dense<0x7F800000> : vector<2x1xf32>
    %324 = vector.multi_reduction <minimumf>, %323, %cst_59 [2] : vector<2x1x128xf32> to vector<2x1xf32>
    %325 = vector.shape_cast %324 : vector<2x1xf32> to vector<2x1x1xf32>
    %326 = vector.broadcast %17 : vector<1x1x128xf32> to vector<2x1x128xf32>
    %327 = vector.broadcast %325 : vector<2x1x1xf32> to vector<2x1x128xf32>
    %328 = arith.cmpf oeq, %326, %327 : vector<2x1x128xf32>
    %329 = arith.extui %328 : vector<2x1x128xi1> to vector<2x1x128xi32>
    %330 = arith.sitofp %329 : vector<2x1x128xi32> to vector<2x1x128xf32>
    %331 = vector.broadcast %311 : vector<2x1x1xf32> to vector<2x1x128xf32>
    %332 = arith.mulf %330, %331 : vector<2x1x128xf32>
    %333 = arith.maximumf %301, %332 : vector<2x1x128xf32>
    %c4_i32 = arith.constant 4 : i32
    %334 = vector.broadcast %c4_i32 : i32 to vector<1x8x1xi32>
    %335 = arith.cmpi eq, %180, %334 : vector<1x8x1xi32>
    %cst_60 = arith.constant 0.000000e+00 : f32
    %336 = vector.shape_cast %335 : vector<1x8x1xi1> to vector<1x8x1xi1>
    %337 = vector.broadcast %336 : vector<1x8x1xi1> to vector<2x8x128xi1>
    %338 = vector.shape_cast %332 : vector<2x1x128xf32> to vector<2x1x128xf32>
    %339 = vector.broadcast %338 : vector<2x1x128xf32> to vector<2x8x128xf32>
    %340 = vector.broadcast %cst_60 : f32 to vector<2x8x128xf32>
    %341 = arith.select %337, %339, %340 : vector<2x8x128xi1>, vector<2x8x128xf32>
    %342 = arith.addf %310, %341 : vector<2x8x128xf32>
    %343 = vector.extract_strided_slice %23 {offsets = [0, 5, 0], sizes = [2, 1, 1], strides = [1, 1, 1]} : vector<2x8x1xf32> to vector<2x1x1xf32>
    %344 = vector.extract_strided_slice %179 {offsets = [0, 5, 0], sizes = [2, 1, 128], strides = [1, 1, 1]} : vector<2x8x128xf32> to vector<2x1x128xf32>
    %cst_61 = arith.constant 1.000000e+09 : f32
    %345 = vector.broadcast %cst_61 : f32 to vector<2x1x128xf32>
    %346 = arith.mulf %333, %345 : vector<2x1x128xf32>
    %347 = arith.addf %344, %346 : vector<2x1x128xf32>
    %cst_62 = arith.constant dense<0x7F800000> : vector<2x1xf32>
    %348 = vector.multi_reduction <minimumf>, %347, %cst_62 [2] : vector<2x1x128xf32> to vector<2x1xf32>
    %349 = vector.shape_cast %348 : vector<2x1xf32> to vector<2x1x1xf32>
    %350 = vector.broadcast %349 : vector<2x1x1xf32> to vector<2x1x128xf32>
    %351 = arith.cmpf ole, %347, %350 : vector<2x1x128xf32>
    %cst_63 = arith.constant 1.280000e+02 : f32
    %352 = vector.shape_cast %17 : vector<1x1x128xf32> to vector<1x1x128xf32>
    %353 = vector.broadcast %352 : vector<1x1x128xf32> to vector<2x1x128xf32>
    %354 = vector.broadcast %cst_63 : f32 to vector<2x1x128xf32>
    %355 = arith.select %351, %353, %354 : vector<2x1x128xi1>, vector<2x1x128xf32>
    %cst_64 = arith.constant dense<0x7F800000> : vector<2x1xf32>
    %356 = vector.multi_reduction <minimumf>, %355, %cst_64 [2] : vector<2x1x128xf32> to vector<2x1xf32>
    %357 = vector.shape_cast %356 : vector<2x1xf32> to vector<2x1x1xf32>
    %358 = vector.broadcast %17 : vector<1x1x128xf32> to vector<2x1x128xf32>
    %359 = vector.broadcast %357 : vector<2x1x1xf32> to vector<2x1x128xf32>
    %360 = arith.cmpf oeq, %358, %359 : vector<2x1x128xf32>
    %361 = arith.extui %360 : vector<2x1x128xi1> to vector<2x1x128xi32>
    %362 = arith.sitofp %361 : vector<2x1x128xi32> to vector<2x1x128xf32>
    %363 = vector.broadcast %343 : vector<2x1x1xf32> to vector<2x1x128xf32>
    %364 = arith.mulf %362, %363 : vector<2x1x128xf32>
    %365 = arith.maximumf %333, %364 : vector<2x1x128xf32>
    %c5_i32 = arith.constant 5 : i32
    %366 = vector.broadcast %c5_i32 : i32 to vector<1x8x1xi32>
    %367 = arith.cmpi eq, %180, %366 : vector<1x8x1xi32>
    %cst_65 = arith.constant 0.000000e+00 : f32
    %368 = vector.shape_cast %367 : vector<1x8x1xi1> to vector<1x8x1xi1>
    %369 = vector.broadcast %368 : vector<1x8x1xi1> to vector<2x8x128xi1>
    %370 = vector.shape_cast %364 : vector<2x1x128xf32> to vector<2x1x128xf32>
    %371 = vector.broadcast %370 : vector<2x1x128xf32> to vector<2x8x128xf32>
    %372 = vector.broadcast %cst_65 : f32 to vector<2x8x128xf32>
    %373 = arith.select %369, %371, %372 : vector<2x8x128xi1>, vector<2x8x128xf32>
    %374 = arith.addf %342, %373 : vector<2x8x128xf32>
    %375 = vector.extract_strided_slice %23 {offsets = [0, 6, 0], sizes = [2, 1, 1], strides = [1, 1, 1]} : vector<2x8x1xf32> to vector<2x1x1xf32>
    %376 = vector.extract_strided_slice %179 {offsets = [0, 6, 0], sizes = [2, 1, 128], strides = [1, 1, 1]} : vector<2x8x128xf32> to vector<2x1x128xf32>
    %cst_66 = arith.constant 1.000000e+09 : f32
    %377 = vector.broadcast %cst_66 : f32 to vector<2x1x128xf32>
    %378 = arith.mulf %365, %377 : vector<2x1x128xf32>
    %379 = arith.addf %376, %378 : vector<2x1x128xf32>
    %cst_67 = arith.constant dense<0x7F800000> : vector<2x1xf32>
    %380 = vector.multi_reduction <minimumf>, %379, %cst_67 [2] : vector<2x1x128xf32> to vector<2x1xf32>
    %381 = vector.shape_cast %380 : vector<2x1xf32> to vector<2x1x1xf32>
    %382 = vector.broadcast %381 : vector<2x1x1xf32> to vector<2x1x128xf32>
    %383 = arith.cmpf ole, %379, %382 : vector<2x1x128xf32>
    %cst_68 = arith.constant 1.280000e+02 : f32
    %384 = vector.shape_cast %17 : vector<1x1x128xf32> to vector<1x1x128xf32>
    %385 = vector.broadcast %384 : vector<1x1x128xf32> to vector<2x1x128xf32>
    %386 = vector.broadcast %cst_68 : f32 to vector<2x1x128xf32>
    %387 = arith.select %383, %385, %386 : vector<2x1x128xi1>, vector<2x1x128xf32>
    %cst_69 = arith.constant dense<0x7F800000> : vector<2x1xf32>
    %388 = vector.multi_reduction <minimumf>, %387, %cst_69 [2] : vector<2x1x128xf32> to vector<2x1xf32>
    %389 = vector.shape_cast %388 : vector<2x1xf32> to vector<2x1x1xf32>
    %390 = vector.broadcast %17 : vector<1x1x128xf32> to vector<2x1x128xf32>
    %391 = vector.broadcast %389 : vector<2x1x1xf32> to vector<2x1x128xf32>
    %392 = arith.cmpf oeq, %390, %391 : vector<2x1x128xf32>
    %393 = arith.extui %392 : vector<2x1x128xi1> to vector<2x1x128xi32>
    %394 = arith.sitofp %393 : vector<2x1x128xi32> to vector<2x1x128xf32>
    %395 = vector.broadcast %375 : vector<2x1x1xf32> to vector<2x1x128xf32>
    %396 = arith.mulf %394, %395 : vector<2x1x128xf32>
    %397 = arith.maximumf %365, %396 : vector<2x1x128xf32>
    %c6_i32 = arith.constant 6 : i32
    %398 = vector.broadcast %c6_i32 : i32 to vector<1x8x1xi32>
    %399 = arith.cmpi eq, %180, %398 : vector<1x8x1xi32>
    %cst_70 = arith.constant 0.000000e+00 : f32
    %400 = vector.shape_cast %399 : vector<1x8x1xi1> to vector<1x8x1xi1>
    %401 = vector.broadcast %400 : vector<1x8x1xi1> to vector<2x8x128xi1>
    %402 = vector.shape_cast %396 : vector<2x1x128xf32> to vector<2x1x128xf32>
    %403 = vector.broadcast %402 : vector<2x1x128xf32> to vector<2x8x128xf32>
    %404 = vector.broadcast %cst_70 : f32 to vector<2x8x128xf32>
    %405 = arith.select %401, %403, %404 : vector<2x8x128xi1>, vector<2x8x128xf32>
    %406 = arith.addf %374, %405 : vector<2x8x128xf32>
    %407 = vector.extract_strided_slice %23 {offsets = [0, 7, 0], sizes = [2, 1, 1], strides = [1, 1, 1]} : vector<2x8x1xf32> to vector<2x1x1xf32>
    %408 = vector.extract_strided_slice %179 {offsets = [0, 7, 0], sizes = [2, 1, 128], strides = [1, 1, 1]} : vector<2x8x128xf32> to vector<2x1x128xf32>
    %cst_71 = arith.constant 1.000000e+09 : f32
    %409 = vector.broadcast %cst_71 : f32 to vector<2x1x128xf32>
    %410 = arith.mulf %397, %409 : vector<2x1x128xf32>
    %411 = arith.addf %408, %410 : vector<2x1x128xf32>
    %cst_72 = arith.constant dense<0x7F800000> : vector<2x1xf32>
    %412 = vector.multi_reduction <minimumf>, %411, %cst_72 [2] : vector<2x1x128xf32> to vector<2x1xf32>
    %413 = vector.shape_cast %412 : vector<2x1xf32> to vector<2x1x1xf32>
    %414 = vector.broadcast %413 : vector<2x1x1xf32> to vector<2x1x128xf32>
    %415 = arith.cmpf ole, %411, %414 : vector<2x1x128xf32>
    %cst_73 = arith.constant 1.280000e+02 : f32
    %416 = vector.shape_cast %17 : vector<1x1x128xf32> to vector<1x1x128xf32>
    %417 = vector.broadcast %416 : vector<1x1x128xf32> to vector<2x1x128xf32>
    %418 = vector.broadcast %cst_73 : f32 to vector<2x1x128xf32>
    %419 = arith.select %415, %417, %418 : vector<2x1x128xi1>, vector<2x1x128xf32>
    %cst_74 = arith.constant dense<0x7F800000> : vector<2x1xf32>
    %420 = vector.multi_reduction <minimumf>, %419, %cst_74 [2] : vector<2x1x128xf32> to vector<2x1xf32>
    %421 = vector.shape_cast %420 : vector<2x1xf32> to vector<2x1x1xf32>
    %422 = vector.broadcast %17 : vector<1x1x128xf32> to vector<2x1x128xf32>
    %423 = vector.broadcast %421 : vector<2x1x1xf32> to vector<2x1x128xf32>
    %424 = arith.cmpf oeq, %422, %423 : vector<2x1x128xf32>
    %425 = arith.extui %424 : vector<2x1x128xi1> to vector<2x1x128xi32>
    %426 = arith.sitofp %425 : vector<2x1x128xi32> to vector<2x1x128xf32>
    %427 = vector.broadcast %407 : vector<2x1x1xf32> to vector<2x1x128xf32>
    %428 = arith.mulf %426, %427 : vector<2x1x128xf32>
    %c7_i32 = arith.constant 7 : i32
    %429 = vector.broadcast %c7_i32 : i32 to vector<1x8x1xi32>
    %430 = arith.cmpi eq, %180, %429 : vector<1x8x1xi32>
    %cst_75 = arith.constant 0.000000e+00 : f32
    %431 = vector.shape_cast %430 : vector<1x8x1xi1> to vector<1x8x1xi1>
    %432 = vector.broadcast %431 : vector<1x8x1xi1> to vector<2x8x128xi1>
    %433 = vector.shape_cast %428 : vector<2x1x128xf32> to vector<2x1x128xf32>
    %434 = vector.broadcast %433 : vector<2x1x128xf32> to vector<2x8x128xf32>
    %435 = vector.broadcast %cst_75 : f32 to vector<2x8x128xf32>
    %436 = arith.select %432, %434, %435 : vector<2x8x128xi1>, vector<2x8x128xf32>
    %437 = arith.addf %406, %436 : vector<2x8x128xf32>
    %cst_76 = arith.constant dense<0.000000e+00> : vector<2x128xf32>
    %438 = vector.multi_reduction <add>, %437, %cst_76 [1] : vector<2x8x128xf32> to vector<2x128xf32>
    %439 = vector.shape_cast %438 : vector<2x128xf32> to vector<2x1x128xf32>
    %cst_77 = arith.constant dense<0.000000e+00> : vector<2x8xf32>
    %440 = vector.multi_reduction <add>, %23, %cst_77 [2] : vector<2x8x1xf32> to vector<2x8xf32>
    %441 = vector.shape_cast %440 : vector<2x8xf32> to vector<2x8x1xf32>
    %cst_78 = arith.constant dense<0.000000e+00> : vector<2x1xf32>
    %442 = vector.multi_reduction <add>, %441, %cst_78 [1] : vector<2x8x1xf32> to vector<2x1xf32>
    %443 = vector.shape_cast %442 : vector<2x1xf32> to vector<2x1x1xf32>
    %cst_79 = arith.constant dense<0.000000e+00> : vector<1x1xf32>
    %444 = vector.multi_reduction <add>, %443, %cst_79 [0] : vector<2x1x1xf32> to vector<1x1xf32>
    %445 = vector.shape_cast %444 : vector<1x1xf32> to vector<1x1x1xf32>
    %cst_80 = arith.constant 1.000000e+00 : f32
    %446 = vector.broadcast %cst_80 : f32 to vector<1x1x1xf32>
    %447 = arith.maximumf %445, %446 : vector<1x1x1xf32>
    %448 = vector.broadcast %29 : vector<2x8x1xf32> to vector<2x8x128xf32>
    %449 = arith.mulf %437, %448 : vector<2x8x128xf32>
    %cst_81 = arith.constant dense<0.000000e+00> : vector<2x128xf32>
    %450 = vector.multi_reduction <add>, %449, %cst_81 [1] : vector<2x8x128xf32> to vector<2x128xf32>
    %451 = vector.shape_cast %450 : vector<2x128xf32> to vector<2x1x128xf32>
    %cst_82 = arith.constant 1.000000e+00 : f32
    %452 = vector.broadcast %cst_82 : f32 to vector<2x1x128xf32>
    %453 = arith.subf %452, %439 : vector<2x1x128xf32>
    %cst_83 = arith.constant 4.000000e+00 : f32
    %454 = vector.broadcast %cst_83 : f32 to vector<2x1x128xf32>
    %455 = arith.mulf %453, %454 : vector<2x1x128xf32>
    %456 = arith.addf %451, %455 : vector<2x1x128xf32>
    %457 = tpu.iota {dimensions = array<i32: 1>} : vector<2x5x128xi32>
    %458 = arith.sitofp %457 : vector<2x5x128xi32> to vector<2x5x128xf32>
    %459 = vector.broadcast %456 : vector<2x1x128xf32> to vector<2x5x128xf32>
    %460 = arith.cmpf oeq, %458, %459 : vector<2x5x128xf32>
    %461 = arith.extui %460 : vector<2x5x128xi1> to vector<2x5x128xi32>
    %462 = arith.sitofp %461 : vector<2x5x128xi32> to vector<2x5x128xf32>
    %463 = arith.mulf %462, %1 : vector<2x5x128xf32>
    %cst_84 = arith.constant dense<0.000000e+00> : vector<2x128xf32>
    %464 = vector.multi_reduction <add>, %463, %cst_84 [1] : vector<2x5x128xf32> to vector<2x128xf32>
    %465 = vector.shape_cast %464 : vector<2x128xf32> to vector<2x1x128xf32>
    %466 = math.log %12 : vector<2x1x128xf32>
    %467 = arith.addf %7, %466 : vector<2x1x128xf32>
    %468 = arith.subf %467, %465 : vector<2x1x128xf32>
    %cst_85 = arith.constant 4.000000e+00 : f32
    %469 = vector.broadcast %cst_85 : f32 to vector<2x1x128xf32>
    %470 = arith.cmpf oeq, %456, %469 : vector<2x1x128xf32>
    %cst_86 = arith.constant 1.000000e-01 : f32
    %cst_87 = arith.constant 1.000000e+00 : f32
    %471 = vector.broadcast %cst_86 : f32 to vector<2x1x128xf32>
    %472 = vector.broadcast %cst_87 : f32 to vector<2x1x128xf32>
    %473 = arith.select %470, %471, %472 : vector<2x1x128xi1>, vector<2x1x128xf32>
    %474 = vector.broadcast %21 : vector<1x1x128xf32> to vector<2x1x128xf32>
    %475 = arith.mulf %474, %473 : vector<2x1x128xf32>
    %476 = arith.mulf %475, %468 : vector<2x1x128xf32>
    %cst_88 = arith.constant dense<0.000000e+00> : vector<2x1xf32>
    %477 = vector.multi_reduction <add>, %476, %cst_88 [2] : vector<2x1x128xf32> to vector<2x1xf32>
    %478 = vector.shape_cast %477 : vector<2x1xf32> to vector<2x1x1xf32>
    %cst_89 = arith.constant dense<0.000000e+00> : vector<2x1xf32>
    %479 = vector.multi_reduction <add>, %478, %cst_89 [1] : vector<2x1x1xf32> to vector<2x1xf32>
    %480 = vector.shape_cast %479 : vector<2x1xf32> to vector<2x1x1xf32>
    %cst_90 = arith.constant dense<0.000000e+00> : vector<1x1xf32>
    %481 = vector.multi_reduction <add>, %480, %cst_90 [0] : vector<2x1x1xf32> to vector<1x1xf32>
    %482 = vector.shape_cast %481 : vector<1x1xf32> to vector<1x1x1xf32>
    %cst_91 = arith.constant dense<0.000000e+00> : vector<2x1xf32>
    %483 = vector.multi_reduction <add>, %475, %cst_91 [2] : vector<2x1x128xf32> to vector<2x1xf32>
    %484 = vector.shape_cast %483 : vector<2x1xf32> to vector<2x1x1xf32>
    %cst_92 = arith.constant dense<0.000000e+00> : vector<2x1xf32>
    %485 = vector.multi_reduction <add>, %484, %cst_92 [1] : vector<2x1x1xf32> to vector<2x1xf32>
    %486 = vector.shape_cast %485 : vector<2x1xf32> to vector<2x1x1xf32>
    %cst_93 = arith.constant dense<0.000000e+00> : vector<1x1xf32>
    %487 = vector.multi_reduction <add>, %486, %cst_93 [0] : vector<2x1x1xf32> to vector<1x1xf32>
    %488 = vector.shape_cast %487 : vector<1x1xf32> to vector<1x1x1xf32>
    %489 = arith.divf %482, %488 : vector<1x1x1xf32>
    %490 = vector.broadcast %7 : vector<2x1x128xf32> to vector<2x5x128xf32>
    %491 = arith.cmpf oge, %1, %490 : vector<2x5x128xf32>
    %cst_94 = arith.constant 5.000000e+00 : f32
    %492 = vector.broadcast %cst_94 : f32 to vector<2x5x128xf32>
    %493 = arith.select %491, %458, %492 : vector<2x5x128xi1>, vector<2x5x128xf32>
    %cst_95 = arith.constant dense<0x7F800000> : vector<2x128xf32>
    %494 = vector.multi_reduction <minimumf>, %493, %cst_95 [1] : vector<2x5x128xf32> to vector<2x128xf32>
    %495 = vector.shape_cast %494 : vector<2x128xf32> to vector<2x1x128xf32>
    %496 = arith.cmpf oeq, %495, %456 : vector<2x1x128xf32>
    %497 = arith.extui %496 : vector<2x1x128xi1> to vector<2x1x128xi32>
    %498 = arith.sitofp %497 : vector<2x1x128xi32> to vector<2x1x128xf32>
    %499 = arith.mulf %498, %439 : vector<2x1x128xf32>
    %cst_96 = arith.constant dense<0.000000e+00> : vector<2x1xf32>
    %500 = vector.multi_reduction <add>, %499, %cst_96 [2] : vector<2x1x128xf32> to vector<2x1xf32>
    %501 = vector.shape_cast %500 : vector<2x1xf32> to vector<2x1x1xf32>
    %cst_97 = arith.constant dense<0.000000e+00> : vector<2x1xf32>
    %502 = vector.multi_reduction <add>, %501, %cst_97 [1] : vector<2x1x1xf32> to vector<2x1xf32>
    %503 = vector.shape_cast %502 : vector<2x1xf32> to vector<2x1x1xf32>
    %cst_98 = arith.constant dense<0.000000e+00> : vector<1x1xf32>
    %504 = vector.multi_reduction <add>, %503, %cst_98 [0] : vector<2x1x1xf32> to vector<1x1xf32>
    %505 = vector.shape_cast %504 : vector<1x1xf32> to vector<1x1x1xf32>
    %cst_99 = arith.constant 1.000000e+02 : f32
    %506 = vector.broadcast %cst_99 : f32 to vector<1x1x1xf32>
    %507 = arith.mulf %506, %505 : vector<1x1x1xf32>
    %cst_100 = arith.constant dense<0.000000e+00> : vector<2x1xf32>
    %508 = vector.multi_reduction <add>, %439, %cst_100 [2] : vector<2x1x128xf32> to vector<2x1xf32>
    %509 = vector.shape_cast %508 : vector<2x1xf32> to vector<2x1x1xf32>
    %cst_101 = arith.constant dense<0.000000e+00> : vector<2x1xf32>
    %510 = vector.multi_reduction <add>, %509, %cst_101 [1] : vector<2x1x1xf32> to vector<2x1xf32>
    %511 = vector.shape_cast %510 : vector<2x1xf32> to vector<2x1x1xf32>
    %cst_102 = arith.constant dense<0.000000e+00> : vector<1x1xf32>
    %512 = vector.multi_reduction <add>, %511, %cst_102 [0] : vector<2x1x1xf32> to vector<1x1xf32>
    %513 = vector.shape_cast %512 : vector<1x1xf32> to vector<1x1x1xf32>
    %cst_103 = arith.constant 1.000000e+00 : f32
    %514 = vector.broadcast %cst_103 : f32 to vector<1x1x1xf32>
    %515 = arith.maximumf %513, %514 : vector<1x1x1xf32>
    %516 = arith.divf %507, %515 : vector<1x1x1xf32>
    %cst_104 = arith.constant 1.000000e+02 : f32
    %517 = vector.broadcast %cst_104 : f32 to vector<1x1x1xf32>
    %518 = arith.subf %517, %516 : vector<1x1x1xf32>
    %cst_105 = arith.constant 4.000000e+00 : f32
    %519 = vector.broadcast %cst_105 : f32 to vector<2x1x128xf32>
    %520 = arith.cmpf one, %495, %519 : vector<2x1x128xf32>
    %521 = arith.extui %520 : vector<2x1x128xi1> to vector<2x1x128xi32>
    %522 = arith.sitofp %521 : vector<2x1x128xi32> to vector<2x1x128xf32>
    %523 = vector.broadcast %21 : vector<1x1x128xf32> to vector<2x1x128xf32>
    %524 = arith.mulf %522, %523 : vector<2x1x128xf32>
    %cst_106 = arith.constant dense<0.000000e+00> : vector<2x1xf32>
    %525 = vector.multi_reduction <add>, %524, %cst_106 [2] : vector<2x1x128xf32> to vector<2x1xf32>
    %526 = vector.shape_cast %525 : vector<2x1xf32> to vector<2x1x1xf32>
    %cst_107 = arith.constant dense<0.000000e+00> : vector<2x1xf32>
    %527 = vector.multi_reduction <add>, %23, %cst_107 [1] : vector<2x8x1xf32> to vector<2x1xf32>
    %528 = vector.shape_cast %527 : vector<2x1xf32> to vector<2x1x1xf32>
    %529 = arith.subf %526, %528 : vector<2x1x1xf32>
    %530 = math.absf %529 : vector<2x1x1xf32>
    %cst_108 = arith.constant dense<0.000000e+00> : vector<2x1xf32>
    %531 = vector.multi_reduction <add>, %530, %cst_108 [2] : vector<2x1x1xf32> to vector<2x1xf32>
    %532 = vector.shape_cast %531 : vector<2x1xf32> to vector<2x1x1xf32>
    %cst_109 = arith.constant dense<0.000000e+00> : vector<2x1xf32>
    %533 = vector.multi_reduction <add>, %532, %cst_109 [1] : vector<2x1x1xf32> to vector<2x1xf32>
    %534 = vector.shape_cast %533 : vector<2x1xf32> to vector<2x1x1xf32>
    %cst_110 = arith.constant dense<0.000000e+00> : vector<1x1xf32>
    %535 = vector.multi_reduction <add>, %534, %cst_110 [0] : vector<2x1x1xf32> to vector<1x1xf32>
    %536 = vector.shape_cast %535 : vector<1x1xf32> to vector<1x1x1xf32>
    %cst_111 = arith.constant 5.000000e-01 : f32
    %537 = vector.broadcast %cst_111 : f32 to vector<1x1x1xf32>
    %538 = arith.mulf %536, %537 : vector<1x1x1xf32>
    %cst_112 = arith.constant 0.000000e+00 : f32
    %539 = vector.broadcast %cst_112 : f32 to vector<2x8x1xf32>
    %540 = vector.extract_strided_slice %3 {offsets = [0, 0, 0], sizes = [2, 1, 128], strides = [1, 1, 1]} : vector<2x4x128xf32> to vector<2x1x128xf32>
    %541 = vector.broadcast %540 : vector<2x1x128xf32> to vector<2x8x128xf32>
    %542 = arith.mulf %437, %541 : vector<2x8x128xf32>
    %cst_113 = arith.constant dense<0.000000e+00> : vector<2x8xf32>
    %543 = vector.multi_reduction <add>, %542, %cst_113 [2] : vector<2x8x128xf32> to vector<2x8xf32>
    %544 = vector.shape_cast %543 : vector<2x8xf32> to vector<2x8x1xf32>
    %545 = vector.extract_strided_slice %5 {offsets = [0, 0, 0], sizes = [2, 8, 1], strides = [1, 1, 1]} : vector<2x8x4xf32> to vector<2x8x1xf32>
    %546 = arith.subf %544, %545 : vector<2x8x1xf32>
    %547 = math.absf %546 : vector<2x8x1xf32>
    %548 = arith.addf %539, %547 : vector<2x8x1xf32>
    %549 = vector.extract_strided_slice %3 {offsets = [0, 1, 0], sizes = [2, 1, 128], strides = [1, 1, 1]} : vector<2x4x128xf32> to vector<2x1x128xf32>
    %550 = vector.broadcast %549 : vector<2x1x128xf32> to vector<2x8x128xf32>
    %551 = arith.mulf %437, %550 : vector<2x8x128xf32>
    %cst_114 = arith.constant dense<0.000000e+00> : vector<2x8xf32>
    %552 = vector.multi_reduction <add>, %551, %cst_114 [2] : vector<2x8x128xf32> to vector<2x8xf32>
    %553 = vector.shape_cast %552 : vector<2x8xf32> to vector<2x8x1xf32>
    %554 = vector.extract_strided_slice %5 {offsets = [0, 0, 1], sizes = [2, 8, 1], strides = [1, 1, 1]} : vector<2x8x4xf32> to vector<2x8x1xf32>
    %555 = arith.subf %553, %554 : vector<2x8x1xf32>
    %556 = math.absf %555 : vector<2x8x1xf32>
    %557 = arith.addf %548, %556 : vector<2x8x1xf32>
    %558 = vector.extract_strided_slice %3 {offsets = [0, 2, 0], sizes = [2, 1, 128], strides = [1, 1, 1]} : vector<2x4x128xf32> to vector<2x1x128xf32>
    %559 = vector.broadcast %558 : vector<2x1x128xf32> to vector<2x8x128xf32>
    %560 = arith.mulf %437, %559 : vector<2x8x128xf32>
    %cst_115 = arith.constant dense<0.000000e+00> : vector<2x8xf32>
    %561 = vector.multi_reduction <add>, %560, %cst_115 [2] : vector<2x8x128xf32> to vector<2x8xf32>
    %562 = vector.shape_cast %561 : vector<2x8xf32> to vector<2x8x1xf32>
    %563 = vector.extract_strided_slice %5 {offsets = [0, 0, 2], sizes = [2, 8, 1], strides = [1, 1, 1]} : vector<2x8x4xf32> to vector<2x8x1xf32>
    %564 = arith.subf %562, %563 : vector<2x8x1xf32>
    %565 = math.absf %564 : vector<2x8x1xf32>
    %566 = arith.addf %557, %565 : vector<2x8x1xf32>
    %567 = vector.extract_strided_slice %3 {offsets = [0, 3, 0], sizes = [2, 1, 128], strides = [1, 1, 1]} : vector<2x4x128xf32> to vector<2x1x128xf32>
    %568 = vector.broadcast %567 : vector<2x1x128xf32> to vector<2x8x128xf32>
    %569 = arith.mulf %437, %568 : vector<2x8x128xf32>
    %cst_116 = arith.constant dense<0.000000e+00> : vector<2x8xf32>
    %570 = vector.multi_reduction <add>, %569, %cst_116 [2] : vector<2x8x128xf32> to vector<2x8xf32>
    %571 = vector.shape_cast %570 : vector<2x8xf32> to vector<2x8x1xf32>
    %572 = vector.extract_strided_slice %5 {offsets = [0, 0, 3], sizes = [2, 8, 1], strides = [1, 1, 1]} : vector<2x8x4xf32> to vector<2x8x1xf32>
    %573 = arith.subf %571, %572 : vector<2x8x1xf32>
    %574 = math.absf %573 : vector<2x8x1xf32>
    %575 = arith.addf %566, %574 : vector<2x8x1xf32>
    %576 = arith.mulf %575, %23 : vector<2x8x1xf32>
    %cst_117 = arith.constant dense<0.000000e+00> : vector<2x8xf32>
    %577 = vector.multi_reduction <add>, %576, %cst_117 [2] : vector<2x8x1xf32> to vector<2x8xf32>
    %578 = vector.shape_cast %577 : vector<2x8xf32> to vector<2x8x1xf32>
    %cst_118 = arith.constant dense<0.000000e+00> : vector<2x1xf32>
    %579 = vector.multi_reduction <add>, %578, %cst_118 [1] : vector<2x8x1xf32> to vector<2x1xf32>
    %580 = vector.shape_cast %579 : vector<2x1xf32> to vector<2x1x1xf32>
    %cst_119 = arith.constant dense<0.000000e+00> : vector<1x1xf32>
    %581 = vector.multi_reduction <add>, %580, %cst_119 [0] : vector<2x1x1xf32> to vector<1x1xf32>
    %582 = vector.shape_cast %581 : vector<1x1xf32> to vector<1x1x1xf32>
    %583 = arith.divf %582, %447 : vector<1x1x1xf32>
    %cst_120 = arith.constant 5.000000e-01 : f32
    %584 = vector.broadcast %cst_120 : f32 to vector<2x8x1xf32>
    %585 = arith.mulf %584, %562 : vector<2x8x1xf32>
    %586 = arith.subf %544, %585 : vector<2x8x1xf32>
    %cst_121 = arith.constant 5.000000e-01 : f32
    %587 = vector.broadcast %cst_121 : f32 to vector<2x8x1xf32>
    %588 = arith.mulf %587, %571 : vector<2x8x1xf32>
    %589 = arith.subf %553, %588 : vector<2x8x1xf32>
    %cst_122 = arith.constant 5.000000e-01 : f32
    %590 = vector.broadcast %cst_122 : f32 to vector<2x8x1xf32>
    %591 = arith.mulf %590, %562 : vector<2x8x1xf32>
    %592 = arith.addf %544, %591 : vector<2x8x1xf32>
    %cst_123 = arith.constant 5.000000e-01 : f32
    %593 = vector.broadcast %cst_123 : f32 to vector<2x8x1xf32>
    %594 = arith.mulf %593, %571 : vector<2x8x1xf32>
    %595 = arith.addf %553, %594 : vector<2x8x1xf32>
    %596 = arith.subf %592, %586 : vector<2x8x1xf32>
    %597 = arith.subf %595, %589 : vector<2x8x1xf32>
    %598 = arith.mulf %596, %597 : vector<2x8x1xf32>
    %599 = arith.minimumf %592, %110 : vector<2x8x1xf32>
    %600 = arith.maximumf %586, %104 : vector<2x8x1xf32>
    %601 = arith.subf %599, %600 : vector<2x8x1xf32>
    %cst_124 = arith.constant 0.000000e+00 : f32
    %602 = vector.broadcast %cst_124 : f32 to vector<2x8x1xf32>
    %603 = arith.maximumf %601, %602 : vector<2x8x1xf32>
    %604 = arith.minimumf %595, %113 : vector<2x8x1xf32>
    %605 = arith.maximumf %589, %107 : vector<2x8x1xf32>
    %606 = arith.subf %604, %605 : vector<2x8x1xf32>
    %cst_125 = arith.constant 0.000000e+00 : f32
    %607 = vector.broadcast %cst_125 : f32 to vector<2x8x1xf32>
    %608 = arith.maximumf %606, %607 : vector<2x8x1xf32>
    %609 = arith.mulf %603, %608 : vector<2x8x1xf32>
    %610 = arith.addf %598, %119 : vector<2x8x1xf32>
    %611 = arith.subf %610, %609 : vector<2x8x1xf32>
    %cst_126 = arith.constant 9.99999996E-13 : f32
    %612 = vector.broadcast %cst_126 : f32 to vector<2x8x1xf32>
    %613 = arith.maximumf %611, %612 : vector<2x8x1xf32>
    %614 = arith.divf %609, %613 : vector<2x8x1xf32>
    %615 = arith.maximumf %592, %110 : vector<2x8x1xf32>
    %616 = arith.minimumf %586, %104 : vector<2x8x1xf32>
    %617 = arith.subf %615, %616 : vector<2x8x1xf32>
    %618 = arith.maximumf %595, %113 : vector<2x8x1xf32>
    %619 = arith.minimumf %589, %107 : vector<2x8x1xf32>
    %620 = arith.subf %618, %619 : vector<2x8x1xf32>
    %621 = arith.mulf %617, %620 : vector<2x8x1xf32>
    %622 = arith.subf %621, %611 : vector<2x8x1xf32>
    %cst_127 = arith.constant 9.99999996E-13 : f32
    %623 = vector.broadcast %cst_127 : f32 to vector<2x8x1xf32>
    %624 = arith.maximumf %621, %623 : vector<2x8x1xf32>
    %625 = arith.divf %622, %624 : vector<2x8x1xf32>
    %626 = arith.subf %614, %625 : vector<2x8x1xf32>
    %cst_128 = arith.constant 1.000000e+00 : f32
    %627 = vector.broadcast %cst_128 : f32 to vector<2x8x1xf32>
    %628 = arith.subf %627, %626 : vector<2x8x1xf32>
    %629 = arith.mulf %628, %23 : vector<2x8x1xf32>
    %cst_129 = arith.constant dense<0.000000e+00> : vector<2x8xf32>
    %630 = vector.multi_reduction <add>, %629, %cst_129 [2] : vector<2x8x1xf32> to vector<2x8xf32>
    %631 = vector.shape_cast %630 : vector<2x8xf32> to vector<2x8x1xf32>
    %cst_130 = arith.constant dense<0.000000e+00> : vector<2x1xf32>
    %632 = vector.multi_reduction <add>, %631, %cst_130 [1] : vector<2x8x1xf32> to vector<2x1xf32>
    %633 = vector.shape_cast %632 : vector<2x1xf32> to vector<2x1x1xf32>
    %cst_131 = arith.constant dense<0.000000e+00> : vector<1x1xf32>
    %634 = vector.multi_reduction <add>, %633, %cst_131 [0] : vector<2x1x1xf32> to vector<1x1xf32>
    %635 = vector.shape_cast %634 : vector<1x1xf32> to vector<1x1x1xf32>
    %636 = arith.divf %635, %447 : vector<1x1x1xf32>
    %637 = tpu.iota {dimensions = array<i32: 2>} : vector<1x1x8xi32>
    %cst_132 = arith.constant 0.000000e+00 : f32
    %638 = vector.broadcast %cst_132 : f32 to vector<1x1x8xf32>
    %c0_i32_133 = arith.constant 0 : i32
    %639 = vector.broadcast %c0_i32_133 : i32 to vector<1x1x8xi32>
    %640 = arith.cmpi eq, %637, %639 : vector<1x1x8xi32>
    %cst_134 = arith.constant 0.000000e+00 : f32
    %641 = vector.shape_cast %489 : vector<1x1x1xf32> to vector<1x1x1xf32>
    %642 = vector.broadcast %641 : vector<1x1x1xf32> to vector<1x1x8xf32>
    %643 = vector.broadcast %cst_134 : f32 to vector<1x1x8xf32>
    %644 = arith.select %640, %642, %643 : vector<1x1x8xi1>, vector<1x1x8xf32>
    %645 = arith.addf %638, %644 : vector<1x1x8xf32>
    %c1_i32_135 = arith.constant 1 : i32
    %646 = vector.broadcast %c1_i32_135 : i32 to vector<1x1x8xi32>
    %647 = arith.cmpi eq, %637, %646 : vector<1x1x8xi32>
    %cst_136 = arith.constant 0.000000e+00 : f32
    %648 = vector.shape_cast %518 : vector<1x1x1xf32> to vector<1x1x1xf32>
    %649 = vector.broadcast %648 : vector<1x1x1xf32> to vector<1x1x8xf32>
    %650 = vector.broadcast %cst_136 : f32 to vector<1x1x8xf32>
    %651 = arith.select %647, %649, %650 : vector<1x1x8xi1>, vector<1x1x8xf32>
    %652 = arith.addf %645, %651 : vector<1x1x8xf32>
    %c2_i32_137 = arith.constant 2 : i32
    %653 = vector.broadcast %c2_i32_137 : i32 to vector<1x1x8xi32>
    %654 = arith.cmpi eq, %637, %653 : vector<1x1x8xi32>
    %cst_138 = arith.constant 0.000000e+00 : f32
    %655 = vector.shape_cast %538 : vector<1x1x1xf32> to vector<1x1x1xf32>
    %656 = vector.broadcast %655 : vector<1x1x1xf32> to vector<1x1x8xf32>
    %657 = vector.broadcast %cst_138 : f32 to vector<1x1x8xf32>
    %658 = arith.select %654, %656, %657 : vector<1x1x8xi1>, vector<1x1x8xf32>
    %659 = arith.addf %652, %658 : vector<1x1x8xf32>
    %c3_i32_139 = arith.constant 3 : i32
    %660 = vector.broadcast %c3_i32_139 : i32 to vector<1x1x8xi32>
    %661 = arith.cmpi eq, %637, %660 : vector<1x1x8xi32>
    %cst_140 = arith.constant 0.000000e+00 : f32
    %662 = vector.shape_cast %583 : vector<1x1x1xf32> to vector<1x1x1xf32>
    %663 = vector.broadcast %662 : vector<1x1x1xf32> to vector<1x1x8xf32>
    %664 = vector.broadcast %cst_140 : f32 to vector<1x1x8xf32>
    %665 = arith.select %661, %663, %664 : vector<1x1x8xi1>, vector<1x1x8xf32>
    %666 = arith.addf %659, %665 : vector<1x1x8xf32>
    %c4_i32_141 = arith.constant 4 : i32
    %667 = vector.broadcast %c4_i32_141 : i32 to vector<1x1x8xi32>
    %668 = arith.cmpi eq, %637, %667 : vector<1x1x8xi32>
    %cst_142 = arith.constant 0.000000e+00 : f32
    %669 = vector.shape_cast %636 : vector<1x1x1xf32> to vector<1x1x1xf32>
    %670 = vector.broadcast %669 : vector<1x1x1xf32> to vector<1x1x8xf32>
    %671 = vector.broadcast %cst_142 : f32 to vector<1x1x8xf32>
    %672 = arith.select %668, %670, %671 : vector<1x1x8xi1>, vector<1x1x8xf32>
    %673 = arith.addf %666, %672 : vector<1x1x8xf32>
    %c0_143 = arith.constant 0 : index
    %c0_144 = arith.constant 0 : index
    %c0_145 = arith.constant 0 : index
    %c0_146 = arith.constant 0 : index
    %674 = vector.load %arg5[%c0_143, %c0_144, %c0_145, %c0_146] : memref<1x1x1x8xf32, #tpu.memory_space<vmem>>, vector<1x1x1x8xf32>
    %675 = vector.shape_cast %674 : vector<1x1x1x8xf32> to vector<1x1x8xf32>
    %676 = vector.shape_cast %673 : vector<1x1x8xf32> to vector<1x1x1x8xf32>
    tpu.vector_store %arg5[%c0_143, %c0_144, %c0_145, %c0_146], %676 {strides = array<i32>} : memref<1x1x1x8xf32, #tpu.memory_space<vmem>>, vector<1x1x1x8xf32>,
    return
  }
  func.func @transform_0(%arg0: i32) -> (i32, i32, i32, i32) {
    %c0_i32 = arith.constant 0 : i32
    %c0_i32_0 = arith.constant 0 : i32
    %c0_i32_1 = arith.constant 0 : i32
    %c0_i32_2 = arith.constant 0 : i32
    return %arg0, %c0_i32, %c0_i32_0, %c0_i32_1 : i32, i32, i32, i32
  }
  func.func @transform_1(%arg0: i32) -> (i32, i32, i32, i32) {
    %c0_i32 = arith.constant 0 : i32
    %c0_i32_0 = arith.constant 0 : i32
    %c0_i32_1 = arith.constant 0 : i32
    %c0_i32_2 = arith.constant 0 : i32
    return %arg0, %c0_i32, %c0_i32_0, %c0_i32_1 : i32, i32, i32, i32
  }
  func.func @transform_2(%arg0: i32) -> (i32, i32, i32) {
    %c0_i32 = arith.constant 0 : i32
    %c0_i32_0 = arith.constant 0 : i32
    %c0_i32_1 = arith.constant 0 : i32
    %c0_i32_2 = arith.constant 0 : i32
    return %c0_i32, %c0_i32_0, %c0_i32_1 : i32, i32, i32
  }
  func.func @transform_3(%arg0: i32) -> (i32, i32, i32) {
    %c0_i32 = arith.constant 0 : i32
    %c0_i32_0 = arith.constant 0 : i32
    %c0_i32_1 = arith.constant 0 : i32
    %c0_i32_2 = arith.constant 0 : i32
    return %c0_i32, %c0_i32_0, %c0_i32_1 : i32, i32, i32
  }
  func.func @transform_4(%arg0: i32) -> (i32, i32, i32, i32) {
    %c0_i32 = arith.constant 0 : i32
    %c0_i32_0 = arith.constant 0 : i32
    %c0_i32_1 = arith.constant 0 : i32
    %c0_i32_2 = arith.constant 0 : i32
    return %arg0, %c0_i32, %c0_i32_0, %c0_i32_1 : i32, i32, i32, i32
  }
}

</mosaic_0001>

<bundles_post_ra>
// kernel: _criterion_device.1
= control target key start
LH: loop header
LB: loop body
LE: loop exit
PB: predicated region body
PF: predicated region fallthrough
CT: control target
= control target key end

     0   :  { %s1707_s15 = smov 0   ;;  %s2355_s0 = inlined_call_operand.vmem [shape: f32[2,2,5,128], index: 0, kind: input, shape index: {}]   ;;  %s2356_s1 = inlined_call_operand.vmem [shape: f32[2,2,4,128], index: 1, kind: input, shape index: {}]   ;;  %s2357_s2 = inlined_call_operand.vmem [shape: f32[2,8,5], index: 2, kind: input, shape index: {}]   ;;  %s2358_s3 = inlined_call_operand.vmem [shape: f32[2,8,4], index: 3, kind: input, shape index: {}]   ;;  %s2359_s4 = inlined_call_operand.vmem [shape: f32[2,1,1,8], index: 4, kind: output, shape index: {}]  }
   0x1 LB: > { %s1547_s16 = sadd.s32 4294967295, %s1670_s15   ;;  %p1551_p0 = scmp.ge.s32.totalorder %s1670_s15, 1  ;;  %s1670_s15 = sphi %s1707_s15, %s14_s15  }
   0x2   : > { %p172_p1 = scmp.lt.s32.totalorder %s1670_s15, 3 }
   0x4   : > { %p173_p2 = pnand %p1551_p0, %p172_p1 }
   0x5   : > { %s1674_s23 = smov (!%p173_p2), 126   ;;  %s1675_s26 = smov (!%p173_p2), 127  }
   0x6   : > { %176 = sbr.rel (%p173_p2) target bundleno = 2835 (0xb13), region = 36  ;;  %p201_p3 = scmp.lt.s32.totalorder (!%p173_p2), %s1547_s16, 1 }
   0x7   : > { %s1680_s19 = smov (!%p173_p2), 125  }
   0xb   : > { %v1718_v0 = vld [vmem:[%s2358_s3] sm:$0xff]  ;;  %v1672_v2 = vmov 1   ;;  %v1673_v3 = vmov 0   ;;  %v1725_v4 = vld [vmem:[%s2357_s2 + $0x8] sm:$0xff]  ;;  %v1676_v15 = vmov 2   ;;  %v1677_v17 = vmov 3  }
   0xc   : > { %v432_v1 = vmul.f32 0.5, %v1718_v0  ;;  %1603 = vset.pattern.permute.xlu0 %v1672_v2  ;;  %1602 = vset.pattern.permute.xlu2 %v1673_v3  ;;  %v1730_v5 = vld [vmem:[%s2357_s2] sm:$0xff]  ;;  %v221_v6 = vld [vmem:[%s2358_s3 + $0x8] sm:$0xff]  ;;  %s2363_s16 = smov (!%p201_p3, %s1547_s16), 1  ;;  %v1678_v56 = vmov 4   ;;  %vm222_vm0 = vcmask 1044480  }
   0xd   : > { %289 = vperm.xlu2 %1602, %v1725_v4   ;;  %1601 = vset.pattern.permute.xlu1 %v1673_v3  ;;  %v433_v7 = vmul.f32 0.5, %v221_v6  ;;  %s1582_s27 = sshll.u32 %s2363_s16, 3  ;;  %s1581_s5 = sshll.u32 %s2363_s16, 4  ;;  %vm590_vm2 = vcmask 1040384   ;;  %vm267_vm3 = vcmask 39936   ;;  %vm636_vm8 = vcmask 1041409  }
   0xe   : > { %436 = vrot.lane.b32.xlu0 %v432_v1, %s1674_s23  ;;  %284 = vperm.xlu1 %1601, %v1730_v5   ;;  %s1798_s30 = scalar_lea.vmem %s2356_s1, %s1582_s27  ;;  %s1839_s8 = scalar_lea.vmem %s2355_s0, %s1581_s5  ;;  %vm688_vm15 = vcmask 1042434  }
   0xf   : > { %v1801_v20 = vld [vmem:[%s1798_s30 + $0x4] sm:$0xf]  ;;  %v215_v57 = vld [vmem:[%s1839_s8 + $0x8] sm:$0x1f]  ;;  %s213_s22 = scalar_lea.vmem %s2359_s4, %s2363_s16 }
  0x10   : > { %v421_v22 = vmul.f32 0.5, %v1801_v20  ;;  %v230_v58 = vsel %vm222_vm0, %v215_v57, -inf  ;;  %v214_v59 = vld [vmem:[%s1839_s8] sm:$0x1f] }
  0x11   : > { %v231_v60 = vrot.slane %v230_v58, 4  ;;  %v223_v61 = vsel %vm222_vm0, %v214_v59, -inf }
  0x12   : > { %v425_v24 = vrot.slane %v421_v22, 2  ;;  %v224_v63 = vrot.slane %v223_v61, 4 }
  0x13   : > { %v232_v62 = vmax.f32 %v230_v58, %v231_v60 }
  0x14   : > { %v1811_v26 = vsub.f32 %v1801_v20, %v425_v24  ;;  %v1814_v27 = vadd.f32 %v425_v24, %v1801_v20  ;;  %v225_v1 = vmax.f32 %v223_v61, %v224_v63 }
  0x16   : > { %438 = vrot.lane.b32.xlu0 %v433_v7, %s1674_s23  ;;  %v483_v29 = vperm.slane %v1811_v26, 0  ;;  %v469_v30 = vperm.slane %v1814_v27, 0  ;;  %v513_v32 = vperm.slane %v1811_v26, 1  ;;  %v501_v35 = vperm.slane %v1814_v27, 1 }
  0x1e   : > { %299 = vperm.xlu0 %1603, %v1730_v5  }
  0x26   : > { %1604 = vset.pattern.permute.xlu0 %v1673_v3 }
  0x67   : > { %v1790_v18 = vpop.permute.xlu2 %289 }
  0x80   : > { %v437_v8 = vpop.permute.xlu0 %436  ;;  %v1803_v21 = vpop.permute.xlu1 %284 }
  0x81   : > { %v1743_v9 = vsub.f32 %v1718_v0, %v437_v8  ;;  %v1746_v10 = vadd.f32 %v437_v8, %v1718_v0 }
  0x83   : > { %472 = vperm.xlu2 %1602, %v1746_v10   ;;  %486 = vperm.xlu0 %1604, %v1743_v9   ;;  %v1762_v14 = vsub.f32 %v1746_v10, %v1743_v9 }
  0x88   : > { %v439_v11 = vpop.permute.xlu0 %438 }
  0x89   : > { %v1750_v12 = vsub.f32 %v221_v6, %v439_v11  ;;  %v1752_v13 = vadd.f32 %v439_v11, %v221_v6 }
  0x8b   : > { %477 = vperm.xlu2 %1602, %v1752_v13   ;;  %1607 = vset.pattern.permute.xlu0 %v1672_v2  ;;  %v1770_v16 = vsub.f32 %v1752_v13, %v1750_v12 }
  0x8c   : > { %491 = vperm.xlu1 %1601, %v1750_v12   ;;  %519 = vperm.xlu0 %1607, %v1750_v12  }
  0x90   : > { %v1793_v19 = vpop.permute.xlu0 %299 }
  0x93   : > { %1605 = vset.pattern.permute.xlu2 %v1672_v2 }
  0x94   : > { %1606 = vset.pattern.permute.xlu1 %v1672_v2  ;;  %503 = vperm.xlu2 %1605, %v1746_v10  }
  0x95   : > { %507 = vperm.xlu1 %1606, %v1752_v13   ;;  %1609 = vset.pattern.permute.xlu0 %v1673_v3 }
  0x96   : > { %363 = vperm.xlu0 %1609, %v221_v6  }
  0x9c   : > { %515 = vperm.xlu2 %1605, %v1743_v9  }
  0x9d   : > { %460 = vrot.lane.b32.xlu1 %v1762_v14, %s1675_s26 }
  0x9e   : > { %1613 = vset.pattern.permute.xlu0 %v1676_v15 }
  0x9f   : > { %389 = vperm.xlu0 %1613, %v1718_v0  }
  0xa4   : > { %1608 = vset.pattern.permute.xlu2 %v1673_v3 }
  0xa5   : > { %462 = vrot.lane.b32.xlu1 %v1770_v16, %s1675_s26  ;;  %358 = vperm.xlu2 %1608, %v1718_v0  }
  0xa7   : > { %1619 = vset.pattern.permute.xlu0 %v1677_v17 }
  0xa8   : > { %409 = vperm.xlu0 %1619, %v221_v6  }
  0xad   : > { %303 = vperm.xlu1 %1606, %v1725_v4   ;;  %1610 = vset.pattern.permute.xlu2 %v1672_v2 }
  0xae   : > { %377 = vperm.xlu2 %1610, %v221_v6  }
  0xb0   : > { %1623 = vset.pattern.permute.xlu0 %v1673_v3 }
  0xb5   : > { %373 = vperm.xlu1 %1606, %v1718_v0  }
  0xb6   : > { %1612 = vset.pattern.permute.xlu2 %v1676_v15 }
  0xb7   : > { %317 = vperm.xlu2 %1612, %v1725_v4  }
  0xbd   : > { %1611 = vset.pattern.permute.xlu1 %v1676_v15 }
  0xbe   : > { %313 = vperm.xlu1 %1611, %v1730_v5  }
  0xbf   : > { %1614 = vset.pattern.permute.xlu2 %v1677_v17 }
  0xc0   : > { %327 = vperm.xlu2 %1614, %v1730_v5  }
  0xc6   : > { %393 = vperm.xlu1 %1611, %v221_v6   ;;  %v226_v6 = vrot.slane %v225_v1, 2 }
  0xc8   : > { %1617 = vset.pattern.permute.xlu2 %v1673_v3  ;;  %v227_v11 = vmax.f32 %v225_v1, %v226_v6 }
  0xce   : > { %1615 = vset.pattern.permute.xlu1 %v1673_v3 }
  0xdd   : > { %v1806_v23 = vpop.permute.xlu2 %472 }
  0xe5   : > { %v478_v31 = vpop.permute.xlu2 %477 }
  0xe6   : > { %v481_v36 = vmin.f32 %v469_v30, %v478_v31  ;;  %v551_v38 = vmax.f32 %v469_v30, %v478_v31 }
  0xee   : > { %v1847_v7 = vpop.permute.xlu2 %503 }
  0xf5   : > { %v1808_v25 = vpop.permute.xlu0 %486 }
  0xf6   : > { %v1851_v15 = vpop.permute.xlu2 %515 }
  0xfe   : > { %v492_v28 = vpop.permute.xlu1 %491  ;;  %v520_v34 = vpop.permute.xlu0 %519 }
  0xff   : > { %v495_v33 = vmax.f32 %v483_v29, %v492_v28  ;;  %v553_v37 = vmin.f32 %v483_v29, %v492_v28  ;;  %v523_v39 = vmax.f32 %v513_v32, %v520_v34  ;;  %v559_v42 = vmin.f32 %v513_v32, %v520_v34  ;;  %v1857_v28 = vpop.permute.xlu2 %358 }
 0x101   : > { %v497_v41 = vsub.f32 %v481_v36, %v495_v33  ;;  %v555_v45 = vsub.f32 %v551_v38, %v553_v37 }
 0x103   : > { %v499_v48 = vmax.f32 %v497_v41, 0.0  ;;  %v447_v41 = vsub.f32 %v1814_v27, %v1811_v26 }
 0x107   : > { %v508_v40 = vpop.permute.xlu1 %507 }
 0x108   : > { %v511_v43 = vmin.f32 %v501_v35, %v508_v40  ;;  %v557_v44 = vmax.f32 %v501_v35, %v508_v40  ;;  %v378_v32 = vpop.permute.xlu2 %377  ;;  %v364_v61 = vpop.permute.xlu0 %363 }
 0x10a   : > { %v525_v46 = vsub.f32 %v511_v43, %v523_v39  ;;  %v561_v47 = vsub.f32 %v557_v44, %v559_v42  ;;  %v1871_v43 = vld [vmem:[%s1798_s30] sm:$0xf] }
 0x10c   : > { %v527_v49 = vmax.f32 %v525_v46, 0.0  ;;  %v1820_v50 = vmul.f32 %v561_v47, %v555_v45  ;;  %v451_v45 = vrot.slane %v447_v41, 1  ;;  %v420_v46 = vmul.f32 0.5, %v1871_v43 }
 0x10e   : > { %v1822_v51 = vmul.f32 %v527_v49, %v499_v48 }
 0x10f   : > { %v461_v52 = vpop.permute.xlu1 %460 }
 0x110   : > { %v1825_v53 = vmul.f32 %v461_v52, %v1762_v14 }
 0x111   : > { %v1866_v39 = vpop.permute.xlu2 %317 }
 0x112   : > { %534 = vperm.xlu1 %1615, %v1825_v53  }
 0x117   : > { %v463_v54 = vpop.permute.xlu1 %462 }
 0x118   : > { %v1829_v55 = vmul.f32 %v463_v54, %v1770_v16  ;;  %v455_v54 = vmul.f32 %v451_v45, %v447_v41 }
 0x11a   : > { %1616 = vset.pattern.permute.xlu1 %v1677_v17  ;;  %539 = vperm.xlu2 %1617, %v1829_v55   ;;  %v1876_v49 = vpop.permute.xlu2 %327  ;;  %v531_v26 = vperm.slane %v455_v54, 0 }
 0x11b   : > { %331 = vperm.xlu1 %1616, %v1725_v4  }
 0x11f   : > { %v1864_v36 = vpop.permute.xlu1 %303 }
 0x122   : > { %1618 = vset.pattern.permute.xlu2 %v1677_v17 }
 0x123   : > { %1620 = vset.pattern.permute.xlu1 %v1678_v56  ;;  %405 = vperm.xlu2 %1618, %v1718_v0   ;;  %v233_v0 = vrot.slane %v232_v62, 2 }
 0x124   : > { %341 = vperm.xlu1 %1620, %v1730_v5  }
 0x125   : > { %v234_v2 = vmax.f32 %v232_v62, %v233_v0 }
 0x127   : > { %v235_v8 = vrot.slane %v234_v2, 1  ;;  %v1874_v48 = vpop.permute.xlu1 %373 }
 0x129   : > { %v1849_v14 = vmax.f32 %v234_v2, %v235_v8 }
 0x12b   : > { %1621 = vset.pattern.permute.xlu2 %v1678_v56  ;;  %v238_v16 = vsub.f32 %v215_v57, %v1849_v14  ;;  %v424_v56 = vrot.slane %v420_v46, 2 }
 0x12c   : > { %345 = vperm.xlu2 %1621, %v1725_v4   ;;  %1622 = vset.pattern.permute.xlu1 %v1673_v3  ;;  %v228_v3 = vrot.slane %v227_v11, 1 }
 0x12d   : > { %v241_v22 = vmul.f32 1.442695, %v238_v16  ;;  %v428_v58 = vsub.f32 %v1871_v43, %v424_v56  ;;  %v430_v60 = vadd.f32 %v424_v56, %v1871_v43 }
 0x12e   : > { %v1854_v17 = vmax.f32 %v227_v11, %v228_v3 }
 0x12f   : > { %1624 = vpow2.f32 %v241_v22  ;;  %v482_v62 = vperm.slane %v428_v58, 0  ;;  %v512_v1 = vperm.slane %v428_v58, 1  ;;  %v446_v6 = vsub.f32 %v430_v60, %v428_v58 }
 0x130   : > { %v237_v24 = vsub.f32 %v214_v59, %v1854_v17  ;;  %v1883_v63 = vpop.permute.xlu1 %313  ;;  %v468_v11 = vperm.slane %v430_v60, 0  ;;  %v500_v3 = vperm.slane %v430_v60, 1 }
 0x131   : > { %v494_v22 = vmax.f32 %v482_v62, %v1808_v25  ;;  %v552_v56 = vmin.f32 %v482_v62, %v1808_v25 }
 0x132   : > { %v239_v29 = vmul.f32 1.442695, %v237_v24  ;;  %v522_v24 = vmax.f32 %v512_v1, %v1851_v15 }
 0x134   : > { %1626 = vpow2.f32 %v239_v29 }
 0x135   : > { %v1625_v30 = vpop.eup %1624  ;;  %1628 = vrcp.f32 %v1820_v50 }
 0x136   : > { %v250_v31 = vsel %vm222_vm0, %v1625_v30, 0.0 }
 0x137   : > { %v251_v34 = vrot.slane %v250_v31, 4 }
 0x139   : > { %v252_v37 = vadd.f32 %v251_v34, %v250_v31  ;;  %v450_v31 = vrot.slane %v446_v6, 1 }
 0x13a   : > { %v1860_v33 = vpop.eup %1626 }
 0x13b   : > { %v243_v35 = vsel %vm222_vm0, %v1860_v33, 0.0  ;;  %v253_v40 = vrot.slane %v252_v37, 2  ;;  %v1629_v34 = vpop.eup %1628 }
 0x13c   : > { %v244_v38 = vrot.slane %v243_v35, 4 }
 0x13d   : > { %v254_v44 = vadd.f32 %v253_v40, %v252_v37  ;;  %v480_v37 = vmin.f32 %v468_v11, %v1806_v23  ;;  %v381_v40 = vperm.slane %v1801_v20, 1 }
 0x13e   : > { %v245_v42 = vadd.f32 %v244_v38, %v243_v35  ;;  %v510_v38 = vmin.f32 %v500_v3, %v1847_v7 }
 0x13f   : > { %v255_v52 = vrot.slane %v254_v44, 1  ;;  %v496_v45 = vsub.f32 %v480_v37, %v494_v22  ;;  %v383_v58 = vsub.f32 %v378_v32, %v381_v40 }
 0x140   : > { %v246_v47 = vrot.slane %v245_v42, 2  ;;  %v524_v46 = vsub.f32 %v510_v38, %v522_v24 }
 0x141   : > { %v1879_v59 = vadd.f32 %v255_v52, %v254_v44  ;;  %v394_v44 = vpop.permute.xlu1 %393 }
 0x142   : > { %v247_v57 = vadd.f32 %v246_v47, %v245_v42  ;;  %v367_v42 = vperm.slane %v1801_v20, 0  ;;  %v1899_v47 = vpop.permute.xlu0 %389  ;;  %v526_v25 = vmax.f32 %v524_v46, 0.0 }
 0x143   : > { %1630 = vrcp.f32 %v1879_v59 }
 0x144   : > { %v248_v27 = vrot.slane %v247_v57, 1  ;;  %v369_v60 = vsub.f32 %v364_v61, %v367_v42 }
 0x146   : > { %v1886_v8 = vadd.f32 %v248_v27, %v247_v57  ;;  %v558_v57 = vmin.f32 %v512_v1, %v1851_v15  ;;  %v550_v27 = vmax.f32 %v468_v11, %v1806_v23  ;;  %v371_v22 = vand.u32 2147483647, %v369_v60 }
 0x147   : > { %v396_v60 = vperm.slane %v1871_v43, 2 }
 0x148   : > { %v554_v61 = vsub.f32 %v550_v27, %v552_v56 }
 0x149   : > { %v1631_v35 = vpop.eup %1630 }
 0x14a   : > { %v1901_v52 = vmul.f32 %v1631_v35, %v1625_v30  ;;  %v556_v30 = vmax.f32 %v500_v3, %v1847_v7  ;;  %v413_v3 = vperm.slane %v1801_v20, 3  ;;  %v410_v35 = vpop.permute.xlu0 %409 }
 0x14c   : > { %v293_v15 = vperm.slane %v1901_v52, 0  ;;  %v307_v32 = vperm.slane %v1901_v52, 1  ;;  %v560_v11 = vsub.f32 %v556_v30, %v558_v57  ;;  %v321_v46 = vperm.slane %v1901_v52, 2 }
 0x14e   : > { %v295_v38 = vmul.f32 %v293_v15, %v1790_v18 }
 0x174   : > { %v540_v0 = vpop.permute.xlu2 %539 }
 0x175   : > { %v543_v2 = vadd.f32 %v540_v0, %v531_v26  ;;  %v397_v0 = vperm.slane %v1801_v20, 2 }
 0x177   : > { %v545_v16 = vsub.f32 %v543_v2, %v1822_v51  ;;  %v399_v7 = vsub.f32 %v394_v44, %v397_v0 }
 0x179   : > { %1632 = vrcp.f32 %v545_v16  ;;  %v565_v29 = vsub.f32 %v1820_v50, %v545_v16  ;;  %v454_v50 = vmul.f32 %v450_v31, %v446_v6  ;;  %v498_v6 = vmax.f32 %v496_v45, 0.0 }
 0x17a   : > { %1634 = vrcp.f32 %v1886_v8  ;;  %v385_v16 = vand.u32 2147483647, %v383_v58  ;;  %v366_v31 = vperm.slane %v1871_v43, 0  ;;  %v309_v45 = vmul.f32 %v307_v32, %v1864_v36 }
 0x17b   : > { %v1896_v41 = vmul.f32 %v1629_v34, %v565_v29  ;;  %v530_v62 = vperm.slane %v454_v50, 0  ;;  %v261_v29 = vlaneseq  ;;  %v380_v34 = vperm.slane %v1871_v43, 1 }
 0x17c   : > { %v528_v37 = vmul.f32 %v526_v25, %v498_v6  ;;  %v387_v57 = vadd.f32 %v385_v16, %v371_v22  ;;  %v401_v58 = vand.u32 2147483647, %v399_v7  ;;  %v368_v18 = vsub.f32 %v1857_v28, %v366_v31 }
 0x17d   : > { %v1935_v27 = vand.u32 127, %v261_v29  ;;  %v382_v36 = vsub.f32 %v1874_v48, %v380_v34  ;;  %v311_v30 = vadd.f32 %v309_v45, %v295_v38  ;;  %v323_v6 = vmul.f32 %v321_v46, %v1866_v39 }
 0x17e   : > { %v335_v25 = vperm.slane %v1901_v52, 3  ;;  %v412_v28 = vperm.slane %v1871_v43, 3  ;;  %v370_v22 = vand.u32 2147483647, %v368_v18 }
 0x17f   : > { %v1633_v54 = vpop.eup %1632  ;;  %vm264_vm1 = vcmp.lt.s32.totalorder %v1935_v27, 8  ;;  %v384_v39 = vand.u32 2147483647, %v382_v36 }
 0x180   : > { %v1635_v26 = vpop.eup %1634  ;;  %v1912_v2 = vmul.f32 %v1633_v54, %v1822_v51  ;;  %v406_v51 = vpop.permute.xlu2 %405  ;;  %v562_v54 = vmul.f32 %v560_v11, %v554_v61  ;;  %v403_v11 = vadd.f32 %v401_v58, %v387_v57 }
 0x181   : > { %v1920_v1 = vmul.f32 %v1635_v26, %v1860_v33  ;;  %v415_v26 = vsub.f32 %v410_v35, %v413_v3  ;;  %v414_v46 = vsub.f32 %v406_v51, %v412_v28  ;;  %v386_v18 = vadd.f32 %v384_v39, %v370_v22 }
 0x182   : > { %v571_v23 = vsub.f32 %v1912_v2, %v1896_v41 }
 0x183   : > { %v306_v50 = vperm.slane %v1920_v1, 1  ;;  %v292_v44 = vperm.slane %v1920_v1, 0  ;;  %v320_v32 = vperm.slane %v1920_v1, 2  ;;  %v417_v48 = vand.u32 2147483647, %v415_v26 }
 0x184   : > { %v535_v24 = vpop.permute.xlu1 %534 }
 0x185   : > { %v542_v33 = vadd.f32 %v535_v24, %v530_v62  ;;  %v349_v62 = vperm.slane %v1901_v52, 4  ;;  %v308_v15 = vmul.f32 %v306_v50, %v1793_v19  ;;  %v294_v16 = vmul.f32 %v292_v44, %v1803_v21 }
 0x186   : > { %v398_v52 = vsub.f32 %v1899_v47, %v396_v60  ;;  %v325_v19 = vadd.f32 %v323_v6, %v311_v30  ;;  %v334_v24 = vperm.slane %v1920_v1, 3  ;;  %v322_v45 = vmul.f32 %v320_v32, %v1883_v63 }
 0x187   : > { %v544_v56 = vsub.f32 %v542_v33, %v528_v37  ;;  %v1679_v21 = vmov 0.0   ;;  %v419_v57 = vadd.f32 %v417_v48, %v403_v11  ;;  %v310_v26 = vadd.f32 %v308_v15, %v294_v16 }
 0x188   : > { %v346_v61 = vpop.permute.xlu2 %345  ;;  %v1960_v44 = vsel %vm264_vm1, 1.0, %v1679_v21  ;;  %v400_v36 = vand.u32 2147483647, %v398_v52  ;;  %v336_v6 = vmul.f32 %v334_v24, %v1876_v49  ;;  %v577_v63 = vsub.f32 0.0, %v571_v23 }
 0x189   : > { %1636 = vrcp.f32 %v544_v56  ;;  %v351_v33 = vmul.f32 %v349_v62, %v346_v61  ;;  %v564_v50 = vsub.f32 %v562_v54, %v544_v56  ;;  %v582_v51 = vsub.f32 1.0, %v1960_v44 }
 0x18a   : > { %1638 = vrcp.f32 %v562_v54  ;;  %v324_v56 = vadd.f32 %v322_v45, %v310_v26  ;;  %v348_v32 = vperm.slane %v1920_v1, 4  ;;  %v573_v61 = vmul.f32 5.0, %v419_v57 }
 0x18b   : > { %v402_v15 = vadd.f32 %v400_v36, %v386_v18  ;;  %v583_v16 = vmul.f32 1e+09, %v582_v51  ;;  %v579_v22 = vmul.f32 2.0, %v577_v63  ;;  %v268_v57 = vsel %vm267_vm3, %v1730_v5, 0.0 }
 0x18c   : > { %v338_v39 = vadd.f32 %v336_v6, %v324_v56  ;;  %v271_v5 = vsel %vm267_vm3, %v1725_v4, 0.0  ;;  %1640 = vlog2.f32 %v1886_v8 }
 0x18d   : > { %v332_v7 = vpop.permute.xlu1 %331  ;;  %1642 = vlog2.f32 %v1879_v59 }
 0x18e   : > { %v337_v35 = vmul.f32 %v335_v25, %v332_v7  ;;  %v416_v25 = vand.u32 2147483647, %v414_v46 }
 0x18f   : > { %v1637_v38 = vpop.eup %1636 }
 0x190   : > { %v339_v58 = vadd.f32 %v337_v35, %v325_v19  ;;  %v1639_v47 = vpop.eup %1638  ;;  %v548_v30 = vmul.f32 %v1637_v38, %v528_v37  ;;  %v418_v52 = vadd.f32 %v416_v25, %v402_v15 }
 0x191   : > { %v568_v62 = vmul.f32 %v1639_v47, %v564_v50 }
 0x192   : > { %v353_v54 = vadd.f32 %v351_v33, %v339_v58  ;;  %v572_v24 = vmul.f32 5.0, %v418_v52  ;;  %v1979_v58 = vcvt.s32.f32 %v1935_v27 }
 0x193   : > { %v570_v48 = vsub.f32 %v548_v30, %v568_v62 }
 0x194   : > { %v355_v11 = vsub.f32 0.0, %v353_v54 }
 0x195   : > { %v576_v23 = vsub.f32 0.0, %v570_v48 }
 0x196   : > { %v575_v37 = vadd.f32 %v573_v61, %v355_v11  ;;  %v342_v49 = vpop.permute.xlu1 %341 }
 0x197   : > { %v350_v41 = vmul.f32 %v348_v32, %v342_v49  ;;  %v578_v38 = vmul.f32 2.0, %v576_v23 }
 0x198   : > { %v581_v2 = vadd.f32 %v579_v22, %v575_v37 }
 0x199   : > { %v352_v7 = vadd.f32 %v350_v41, %v338_v39 }
 0x19a   : > { %v1968_v19 = vadd.f32 %v583_v16, %v581_v2 }
 0x19b   : > { %v354_v35 = vsub.f32 0.0, %v352_v7 }
 0x19c   : > { %v594_v1 = vsel %vm590_vm2, %v1968_v19, inf }
 0x19d   : > { %v574_v33 = vadd.f32 %v572_v24, %v354_v35  ;;  %595 = vmin.xlane.f32.xlu2 %v594_v1  ;;  %v2008_v1 = vshrl.u32 %v261_v29, 7 }
 0x19f   : > { %v580_v45 = vadd.f32 %v578_v38, %v574_v33  ;;  %vm617_vm13 = vcmp.eq.s32.totalorder %v2008_v1, 0  ;;  %vm669_vm14 = vcmp.eq.s32.totalorder %v2008_v1, 1 }
 0x1a1   : > { %v1972_v46 = vadd.f32 %v583_v16, %v580_v45 }
 0x1a3   : > { %v591_v50 = vsel %vm590_vm2, %v1972_v46, inf }
 0x1a4   : > { %592 = vmin.xlane.f32.xlu1 %v591_v50 }
 0x1ac   : > { %269 = vadd.xlane.f32.xlu1 %v268_v57 }
 0x210   : > { %v596_v47 = vpop.xlane.xlu2 %595 }
 0x211   : > { %vm598_vm4 = vcmp.le.f32.partialorder %v1968_v19, %v596_v47 }
 0x212   : > { %v600_v26 = vsel %vm598_vm4, %v1979_v58, 128.0 }
 0x213   : > { %v604_v18 = vsel %vm590_vm2, %v600_v26, inf }
 0x214   : > { %605 = vmin.xlane.f32.xlu2 %v604_v18 }
 0x217   : > { %v593_v36 = vpop.xlane.xlu1 %592 }
 0x218   : > { %vm597_vm5 = vcmp.le.f32.partialorder %v1972_v46, %v593_v36 }
 0x219   : > { %v599_v30 = vsel %vm597_vm5, %v1979_v58, 128.0 }
 0x21a   : > { %v601_v6 = vsel %vm590_vm2, %v599_v30, inf }
 0x21b   : > { %602 = vmin.xlane.f32.xlu0 %v601_v6 }
 0x21c   : > { %272 = vadd.xlane.f32.xlu2 %v271_v5 }
 0x21f   : > { %v1994_v25 = vpop.xlane.xlu1 %269 }
 0x287   : > { %v606_v63 = vpop.xlane.xlu2 %605 }
 0x288   : > { %vm608_vm6 = vcmp.eq.f32.partialorder %v1979_v58, %v606_v63 }
 0x289   : > { %v1558_v54 = vsel %vm608_vm6, 1.0, %v1679_v21  ;;  %vm721_vm6 = vcmp.eq.s32.totalorder %v2008_v1, 2 }
 0x28e   : > { %v603_v51 = vpop.xlane.xlu0 %602 }
 0x28f   : > { %vm607_vm7 = vcmp.eq.f32.partialorder %v1979_v58, %v603_v51  ;;  %v1992_v56 = vpop.xlane.xlu2 %272 }
 0x290   : > { %v1557_v62 = vsel %vm607_vm7, 1.0, %v1679_v21  ;;  %v614_v4 = vmul.f32 %v1558_v54, %v1992_v56  ;;  %vm740_vm7 = vcmask 1043459  }
 0x291   : > { %v613_v32 = vmul.f32 %v1557_v62, %v1994_v25 }
 0x292   : > { %v616_v61 = vmax.f32 %v614_v4, 0.0  ;;  %v621_v50 = vperm.slane %v614_v4, 0 }
 0x293   : > { %v615_v11 = vmax.f32 %v613_v32, 0.0  ;;  %v620_v26 = vperm.slane %v613_v32, 0 }
 0x294   : > { %v627_v15 = vmul.f32 1e+09, %v616_v61  ;;  %v623_v6 = vsel %vm617_vm13, %v621_v50, 0.0 }
 0x295   : > { %v626_v48 = vmul.f32 1e+09, %v615_v11  ;;  %v622_v54 = vsel %vm617_vm13, %v620_v26, 0.0  ;;  %vm792_vm13 = vcmask 1044484  }
 0x296   : > { %v631_v16 = vrot.slane %v627_v15, 7 }
 0x297   : > { %v630_v37 = vrot.slane %v626_v48, 7 }
 0x298   : > { %v635_v22 = vadd.f32 %v631_v16, %v1968_v19 }
 0x299   : > { %v634_v49 = vadd.f32 %v630_v37, %v1972_v46 }
 0x29a   : > { %v640_v39 = vsel %vm636_vm8, %v635_v22, inf }
 0x29b   : > { %641 = vmin.xlane.f32.xlu1 %v640_v39  ;;  %v637_v52 = vsel %vm636_vm8, %v634_v49, inf }
 0x29c   : > { %638 = vmin.xlane.f32.xlu0 %v637_v52 }
 0x30e   : > { %v642_v41 = vpop.xlane.xlu1 %641 }
 0x30f   : > { %vm644_vm9 = vcmp.le.f32.partialorder %v635_v22, %v642_v41  ;;  %v639_v2 = vpop.xlane.xlu0 %638 }
 0x310   : > { %vm643_vm10 = vcmp.le.f32.partialorder %v634_v49, %v639_v2  ;;  %v646_v23 = vsel %vm644_vm9, %v1979_v58, 128.0 }
 0x311   : > { %v650_v7 = vsel %vm636_vm8, %v646_v23, inf  ;;  %v645_v24 = vsel %vm643_vm10, %v1979_v58, 128.0 }
 0x312   : > { %651 = vmin.xlane.f32.xlu0 %v650_v7  ;;  %v647_v35 = vsel %vm636_vm8, %v645_v24, inf }
 0x313   : > { %648 = vmin.xlane.f32.xlu2 %v647_v35 }
 0x385   : > { %v652_v33 = vpop.xlane.xlu0 %651 }
 0x386   : > { %vm654_vm11 = vcmp.eq.f32.partialorder %v1979_v58, %v652_v33  ;;  %v649_v38 = vpop.xlane.xlu2 %648 }
 0x387   : > { %v1560_v45 = vsel %vm654_vm11, 1.0, %v1679_v21  ;;  %vm653_vm12 = vcmp.eq.f32.partialorder %v1979_v58, %v649_v38 }
 0x388   : > { %v660_v57 = vmul.f32 %v1560_v45, %v1992_v56  ;;  %v1559_v47 = vsel %vm653_vm12, 1.0, %v1679_v21  ;;  %vm773_vm12 = vcmp.eq.s32.totalorder %v2008_v1, 3 }
 0x389   : > { %v659_v29 = vmul.f32 %v1559_v47, %v1994_v25 }
 0x38a   : > { %v664_v18 = vrot.slane %v660_v57, 1  ;;  %v673_v36 = vperm.slane %v660_v57, 1 }
 0x38b   : > { %v663_v30 = vrot.slane %v659_v29, 1  ;;  %v672_v5 = vperm.slane %v659_v29, 1 }
 0x38c   : > { %v668_v63 = vmax.f32 %v616_v61, %v664_v18  ;;  %v675_v51 = vsel %vm669_vm14, %v673_v36, 0.0 }
 0x38d   : > { %v677_v62 = vadd.f32 %v675_v51, %v623_v6  ;;  %v667_v4 = vmax.f32 %v615_v11, %v663_v30  ;;  %v674_v15 = vsel %vm669_vm14, %v672_v5, 0.0 }
 0x38e   : > { %v676_v48 = vadd.f32 %v674_v15, %v622_v54  ;;  %v679_v16 = vmul.f32 1e+09, %v668_v63 }
 0x38f   : > { %v678_v37 = vmul.f32 1e+09, %v667_v4 }
 0x390   : > { %v683_v22 = vrot.slane %v679_v16, 6 }
 0x391   : > { %v682_v32 = vrot.slane %v678_v37, 6 }
 0x392   : > { %v687_v49 = vadd.f32 %v683_v22, %v1968_v19 }
 0x393   : > { %v686_v39 = vadd.f32 %v682_v32, %v1972_v46 }
 0x394   : > { %v692_v52 = vsel %vm688_vm15, %v687_v49, inf }
 0x395   : > { %693 = vmin.xlane.f32.xlu2 %v692_v52  ;;  %v689_v61 = vsel %vm688_vm15, %v686_v39, inf }
 0x396   : > { %690 = vmin.xlane.f32.xlu1 %v689_v61 }
 0x408   : > { %v694_v41 = vpop.xlane.xlu2 %693 }
 0x409   : > { %vm696_vm1 = vcmp.le.f32.partialorder %v687_v49, %v694_v41  ;;  %v691_v11 = vpop.xlane.xlu1 %690 }
 0x40a   : > { %vm695_vm2 = vcmp.le.f32.partialorder %v686_v39, %v691_v11  ;;  %v698_v2 = vsel %vm696_vm1, %v1979_v58, 128.0 }
 0x40b   : > { %v702_v23 = vsel %vm688_vm15, %v698_v2, inf  ;;  %v697_v7 = vsel %vm695_vm2, %v1979_v58, 128.0 }
 0x40c   : > { %703 = vmin.xlane.f32.xlu1 %v702_v23  ;;  %v699_v24 = vsel %vm688_vm15, %v697_v7, inf }
 0x40d   : > { %700 = vmin.xlane.f32.xlu0 %v699_v24 }
 0x47f   : > { %v704_v35 = vpop.xlane.xlu1 %703 }
 0x480   : > { %vm706_vm4 = vcmp.eq.f32.partialorder %v1979_v58, %v704_v35  ;;  %v701_v33 = vpop.xlane.xlu0 %700 }
 0x481   : > { %v1562_v38 = vsel %vm706_vm4, 1.0, %v1679_v21  ;;  %vm705_vm5 = vcmp.eq.f32.partialorder %v1979_v58, %v701_v33  ;;  %vm825_vm4 = vcmp.eq.s32.totalorder %v2008_v1, 4 }
 0x482   : > { %v712_v45 = vmul.f32 %v1562_v38, %v1992_v56  ;;  %v1561_v50 = vsel %vm705_vm5, 1.0, %v1679_v21  ;;  %vm844_vm5 = vcmask 1045509  }
 0x483   : > { %v711_v57 = vmul.f32 %v1561_v50, %v1994_v25 }
 0x484   : > { %v716_v47 = vrot.slane %v712_v45, 2  ;;  %v725_v26 = vperm.slane %v712_v45, 2 }
 0x485   : > { %v715_v29 = vrot.slane %v711_v57, 2  ;;  %v724_v18 = vperm.slane %v711_v57, 2 }
 0x486   : > { %v720_v36 = vmax.f32 %v668_v63, %v716_v47  ;;  %v727_v30 = vsel %vm721_vm6, %v725_v26, 0.0 }
 0x487   : > { %v729_v5 = vadd.f32 %v727_v30, %v677_v62  ;;  %v719_v6 = vmax.f32 %v667_v4, %v715_v29  ;;  %v726_v51 = vsel %vm721_vm6, %v724_v18, 0.0 }
 0x488   : > { %v728_v54 = vadd.f32 %v726_v51, %v676_v48  ;;  %v731_v15 = vmul.f32 1e+09, %v720_v36 }
 0x489   : > { %v730_v16 = vmul.f32 1e+09, %v719_v6 }
 0x48a   : > { %v735_v37 = vrot.slane %v731_v15, 5 }
 0x48b   : > { %v734_v22 = vrot.slane %v730_v16, 5 }
 0x48c   : > { %v739_v32 = vadd.f32 %v735_v37, %v1968_v19 }
 0x48d   : > { %v738_v49 = vadd.f32 %v734_v22, %v1972_v46 }
 0x48e   : > { %v744_v39 = vsel %vm740_vm7, %v739_v32, inf }
 0x48f   : > { %745 = vmin.xlane.f32.xlu0 %v744_v39  ;;  %v741_v52 = vsel %vm740_vm7, %v738_v49, inf }
 0x490   : > { %742 = vmin.xlane.f32.xlu2 %v741_v52 }
 0x502   : > { %v746_v63 = vpop.xlane.xlu0 %745 }
 0x503   : > { %vm748_vm8 = vcmp.le.f32.partialorder %v739_v32, %v746_v63  ;;  %v743_v62 = vpop.xlane.xlu2 %742 }
 0x504   : > { %vm747_vm9 = vcmp.le.f32.partialorder %v738_v49, %v743_v62  ;;  %v750_v4 = vsel %vm748_vm8, %v1979_v58, 128.0 }
 0x505   : > { %v754_v48 = vsel %vm740_vm7, %v750_v4, inf  ;;  %v749_v61 = vsel %vm747_vm9, %v1979_v58, 128.0 }
 0x506   : > { %755 = vmin.xlane.f32.xlu2 %v754_v48  ;;  %v751_v41 = vsel %vm740_vm7, %v749_v61, inf }
 0x507   : > { %752 = vmin.xlane.f32.xlu1 %v751_v41 }
 0x579   : > { %v756_v11 = vpop.xlane.xlu2 %755 }
 0x57a   : > { %vm758_vm10 = vcmp.eq.f32.partialorder %v1979_v58, %v756_v11  ;;  %v753_v2 = vpop.xlane.xlu1 %752 }
 0x57b   : > { %v1564_v23 = vsel %vm758_vm10, 1.0, %v1679_v21  ;;  %vm757_vm11 = vcmp.eq.f32.partialorder %v1979_v58, %v753_v2  ;;  %vm877_vm10 = vcmp.eq.s32.totalorder %v2008_v1, 5 }
 0x57c   : > { %v764_v7 = vmul.f32 %v1564_v23, %v1992_v56  ;;  %v1563_v24 = vsel %vm757_vm11, 1.0, %v1679_v21  ;;  %vm896_vm11 = vcmask 1046534  }
 0x57d   : > { %v763_v35 = vmul.f32 %v1563_v24, %v1994_v25 }
 0x57e   : > { %v768_v33 = vrot.slane %v764_v7, 3  ;;  %v777_v38 = vperm.slane %v764_v7, 3 }
 0x57f   : > { %v767_v45 = vrot.slane %v763_v35, 3  ;;  %v776_v50 = vperm.slane %v763_v35, 3 }
 0x580   : > { %v772_v57 = vmax.f32 %v720_v36, %v768_v33  ;;  %v779_v47 = vsel %vm773_vm12, %v777_v38, 0.0 }
 0x581   : > { %v781_v26 = vadd.f32 %v779_v47, %v729_v5  ;;  %v771_v29 = vmax.f32 %v719_v6, %v767_v45  ;;  %v778_v18 = vsel %vm773_vm12, %v776_v50, 0.0 }
 0x582   : > { %v780_v30 = vadd.f32 %v778_v18, %v728_v54  ;;  %v783_v51 = vmul.f32 1e+09, %v772_v57 }
 0x583   : > { %v782_v15 = vmul.f32 1e+09, %v771_v29 }
 0x584   : > { %v787_v16 = vrot.slane %v783_v51, 4 }
 0x585   : > { %v786_v37 = vrot.slane %v782_v15, 4 }
 0x586   : > { %v791_v22 = vadd.f32 %v787_v16, %v1968_v19 }
 0x587   : > { %v790_v32 = vadd.f32 %v786_v37, %v1972_v46 }
 0x588   : > { %v796_v49 = vsel %vm792_vm13, %v791_v22, inf }
 0x589   : > { %797 = vmin.xlane.f32.xlu1 %v796_v49  ;;  %v793_v39 = vsel %vm792_vm13, %v790_v32, inf }
 0x58a   : > { %794 = vmin.xlane.f32.xlu0 %v793_v39 }
 0x5fc   : > { %v798_v36 = vpop.xlane.xlu1 %797 }
 0x5fd   : > { %vm800_vm14 = vcmp.le.f32.partialorder %v791_v22, %v798_v36  ;;  %v795_v5 = vpop.xlane.xlu0 %794 }
 0x5fe   : > { %vm799_vm15 = vcmp.le.f32.partialorder %v790_v32, %v795_v5  ;;  %v802_v6 = vsel %vm800_vm14, %v1979_v58, 128.0 }
 0x5ff   : > { %v806_v54 = vsel %vm792_vm13, %v802_v6, inf  ;;  %v801_v52 = vsel %vm799_vm15, %v1979_v58, 128.0 }
 0x600   : > { %807 = vmin.xlane.f32.xlu0 %v806_v54  ;;  %v803_v63 = vsel %vm792_vm13, %v801_v52, inf }
 0x601   : > { %804 = vmin.xlane.f32.xlu2 %v803_v63 }
 0x673   : > { %v808_v62 = vpop.xlane.xlu0 %807 }
 0x674   : > { %vm810_vm1 = vcmp.eq.f32.partialorder %v1979_v58, %v808_v62  ;;  %v805_v4 = vpop.xlane.xlu2 %804 }
 0x675   : > { %v1566_v48 = vsel %vm810_vm1, 1.0, %v1679_v21  ;;  %vm809_vm2 = vcmp.eq.f32.partialorder %v1979_v58, %v805_v4  ;;  %vm929_vm1 = vcmp.eq.s32.totalorder %v2008_v1, 6 }
 0x676   : > { %v816_v61 = vmul.f32 %v1566_v48, %v1992_v56  ;;  %v1565_v41 = vsel %vm809_vm2, 1.0, %v1679_v21  ;;  %vm948_vm2 = vcmask 1047559  }
 0x677   : > { %v815_v11 = vmul.f32 %v1565_v41, %v1994_v25 }
 0x678   : > { %v820_v2 = vrot.slane %v816_v61, 4  ;;  %v829_v23 = vperm.slane %v816_v61, 4 }
 0x679   : > { %v819_v7 = vrot.slane %v815_v11, 4  ;;  %v828_v24 = vperm.slane %v815_v11, 4 }
 0x67a   : > { %v824_v35 = vmax.f32 %v772_v57, %v820_v2  ;;  %v831_v33 = vsel %vm825_vm4, %v829_v23, 0.0 }
 0x67b   : > { %v833_v38 = vadd.f32 %v831_v33, %v781_v26  ;;  %v823_v45 = vmax.f32 %v771_v29, %v819_v7  ;;  %v830_v50 = vsel %vm825_vm4, %v828_v24, 0.0 }
 0x67c   : > { %v832_v47 = vadd.f32 %v830_v50, %v780_v30  ;;  %v835_v18 = vmul.f32 1e+09, %v824_v35 }
 0x67d   : > { %v834_v51 = vmul.f32 1e+09, %v823_v45 }
 0x67e   : > { %v839_v15 = vrot.slane %v835_v18, 3 }
 0x67f   : > { %v838_v16 = vrot.slane %v834_v51, 3 }
 0x680   : > { %v843_v37 = vadd.f32 %v839_v15, %v1968_v19 }
 0x681   : > { %v842_v22 = vadd.f32 %v838_v16, %v1972_v46 }
 0x682   : > { %v848_v32 = vsel %vm844_vm5, %v843_v37, inf }
 0x683   : > { %849 = vmin.xlane.f32.xlu2 %v848_v32  ;;  %v845_v49 = vsel %vm844_vm5, %v842_v22, inf }
 0x684   : > { %846 = vmin.xlane.f32.xlu1 %v845_v49 }
 0x6f6   : > { %v850_v57 = vpop.xlane.xlu2 %849 }
 0x6f7   : > { %vm852_vm6 = vcmp.le.f32.partialorder %v843_v37, %v850_v57  ;;  %v847_v26 = vpop.xlane.xlu1 %846 }
 0x6f8   : > { %vm851_vm7 = vcmp.le.f32.partialorder %v842_v22, %v847_v26  ;;  %v854_v29 = vsel %vm852_vm6, %v1979_v58, 128.0 }
 0x6f9   : > { %v858_v30 = vsel %vm844_vm5, %v854_v29, inf  ;;  %v853_v39 = vsel %vm851_vm7, %v1979_v58, 128.0 }
 0x6fa   : > { %859 = vmin.xlane.f32.xlu1 %v858_v30  ;;  %v855_v36 = vsel %vm844_vm5, %v853_v39, inf }
 0x6fb   : > { %856 = vmin.xlane.f32.xlu0 %v855_v36 }
 0x76d   : > { %v860_v5 = vpop.xlane.xlu1 %859 }
 0x76e   : > { %vm862_vm8 = vcmp.eq.f32.partialorder %v1979_v58, %v860_v5  ;;  %v857_v6 = vpop.xlane.xlu0 %856 }
 0x76f   : > { %v1568_v54 = vsel %vm862_vm8, 1.0, %v1679_v21  ;;  %vm861_vm9 = vcmp.eq.f32.partialorder %v1979_v58, %v857_v6  ;;  %vm973_vm8 = vcmp.eq.s32.totalorder %v2008_v1, 7 }
 0x770   : > { %v868_v52 = vmul.f32 %v1568_v54, %v1992_v56  ;;  %v1567_v63 = vsel %vm861_vm9, 1.0, %v1679_v21 }
 0x771   : > { %v867_v62 = vmul.f32 %v1567_v63, %v1994_v25 }
 0x772   : > { %v872_v4 = vrot.slane %v868_v52, 5  ;;  %v881_v48 = vperm.slane %v868_v52, 5 }
 0x773   : > { %v871_v61 = vrot.slane %v867_v62, 5  ;;  %v880_v41 = vperm.slane %v867_v62, 5 }
 0x774   : > { %v876_v11 = vmax.f32 %v824_v35, %v872_v4  ;;  %v883_v2 = vsel %vm877_vm10, %v881_v48, 0.0 }
 0x775   : > { %v885_v23 = vadd.f32 %v883_v2, %v833_v38  ;;  %v875_v7 = vmax.f32 %v823_v45, %v871_v61  ;;  %v882_v24 = vsel %vm877_vm10, %v880_v41, 0.0 }
 0x776   : > { %v884_v33 = vadd.f32 %v882_v24, %v832_v47  ;;  %v887_v50 = vmul.f32 1e+09, %v876_v11 }
 0x777   : > { %v886_v18 = vmul.f32 1e+09, %v875_v7 }
 0x778   : > { %v891_v51 = vrot.slane %v887_v50, 2 }
 0x779   : > { %v890_v15 = vrot.slane %v886_v18, 2 }
 0x77a   : > { %v895_v16 = vadd.f32 %v891_v51, %v1968_v19 }
 0x77b   : > { %v894_v37 = vadd.f32 %v890_v15, %v1972_v46 }
 0x77c   : > { %v900_v22 = vsel %vm896_vm11, %v895_v16, inf }
 0x77d   : > { %901 = vmin.xlane.f32.xlu0 %v900_v22  ;;  %v897_v32 = vsel %vm896_vm11, %v894_v37, inf }
 0x77e   : > { %898 = vmin.xlane.f32.xlu2 %v897_v32 }
 0x7f0   : > { %v902_v35 = vpop.xlane.xlu0 %901 }
 0x7f1   : > { %vm904_vm12 = vcmp.le.f32.partialorder %v895_v16, %v902_v35  ;;  %v899_v38 = vpop.xlane.xlu2 %898 }
 0x7f2   : > { %vm903_vm13 = vcmp.le.f32.partialorder %v894_v37, %v899_v38  ;;  %v906_v45 = vsel %vm904_vm12, %v1979_v58, 128.0 }
 0x7f3   : > { %v910_v47 = vsel %vm896_vm11, %v906_v45, inf  ;;  %v905_v49 = vsel %vm903_vm13, %v1979_v58, 128.0  ;;  %v1659_v45 = vld [vmem:[%s2357_s2] sm:$0xff] }
 0x7f4   : > { %911 = vmin.xlane.f32.xlu2 %v910_v47  ;;  %v907_v57 = vsel %vm896_vm11, %v905_v49, inf  ;;  %v274_v47 = vmul.f32 %v1659_v45, %v1979_v58 }
 0x7f5   : > { %908 = vmin.xlane.f32.xlu1 %v907_v57 }
 0x7f6   : > { %v276_v49 = vsel %vm267_vm3, %v274_v47, 0.0 }
 0x867   : > { %v912_v26 = vpop.xlane.xlu2 %911 }
 0x868   : > { %vm914_vm14 = vcmp.eq.f32.partialorder %v1979_v58, %v912_v26  ;;  %v909_v29 = vpop.xlane.xlu1 %908 }
 0x869   : > { %v1570_v30 = vsel %vm914_vm14, 1.0, %v1679_v21  ;;  %vm913_vm15 = vcmp.eq.f32.partialorder %v1979_v58, %v909_v29 }
 0x86a   : > { %v920_v39 = vmul.f32 %v1570_v30, %v1992_v56  ;;  %v1569_v36 = vsel %vm913_vm15, 1.0, %v1679_v21 }
 0x86b   : > { %v919_v5 = vmul.f32 %v1569_v36, %v1994_v25 }
 0x86c   : > { %v924_v6 = vrot.slane %v920_v39, 6  ;;  %v933_v54 = vperm.slane %v920_v39, 6 }
 0x86d   : > { %v923_v52 = vrot.slane %v919_v5, 6  ;;  %v932_v63 = vperm.slane %v919_v5, 6 }
 0x86e   : > { %v935_v62 = vsel %vm929_vm1, %v933_v54, 0.0  ;;  %v928_v4 = vmax.f32 %v876_v11, %v924_v6  ;;  %v1658_v11 = vld [vmem:[%s2357_s2 + $0x8] sm:$0xff] }
 0x86f   : > { %v937_v48 = vadd.f32 %v935_v62, %v885_v23  ;;  %v934_v61 = vsel %vm929_vm1, %v932_v63, 0.0  ;;  %v927_v41 = vmax.f32 %v875_v7, %v923_v52  ;;  %v275_v23 = vmul.f32 %v1658_v11, %v1979_v58 }
 0x870   : > { %v936_v2 = vadd.f32 %v934_v61, %v884_v33  ;;  %v939_v24 = vmul.f32 1e+09, %v928_v4 }
 0x871   : > { %v938_v50 = vmul.f32 1e+09, %v927_v41  ;;  %v279_v7 = vsel %vm267_vm3, %v275_v23, 0.0 }
 0x872   : > { %v943_v18 = vrot.slane %v939_v24, 1 }
 0x873   : > { %v942_v51 = vrot.slane %v938_v50, 1 }
 0x874   : > { %v947_v15 = vadd.f32 %v943_v18, %v1968_v19 }
 0x875   : > { %v946_v16 = vadd.f32 %v942_v51, %v1972_v46 }
 0x876   : > { %v952_v37 = vsel %vm948_vm2, %v947_v15, inf }
 0x877   : > { %953 = vmin.xlane.f32.xlu1 %v952_v37  ;;  %v949_v22 = vsel %vm948_vm2, %v946_v16, inf }
 0x878   : > { %950 = vmin.xlane.f32.xlu0 %v949_v22 }
 0x87f   : > { %280 = vadd.xlane.f32.xlu1 %v279_v7 }
 0x8ea   : > { %v954_v33 = vpop.xlane.xlu1 %953 }
 0x8eb   : > { %vm956_vm4 = vcmp.le.f32.partialorder %v947_v15, %v954_v33  ;;  %v951_v19 = vpop.xlane.xlu0 %950 }
 0x8ec   : > { %vm955_vm5 = vcmp.le.f32.partialorder %v946_v16, %v951_v19  ;;  %v958_v46 = vsel %vm956_vm4, %v1979_v58, 128.0 }
 0x8ed   : > { %v962_v32 = vsel %vm948_vm2, %v958_v46, inf  ;;  %v957_v35 = vsel %vm955_vm5, %v1979_v58, 128.0 }
 0x8ee   : > { %963 = vmin.xlane.f32.xlu0 %v962_v32  ;;  %v959_v38 = vsel %vm948_vm2, %v957_v35, inf }
 0x8ef   : > { %960 = vmin.xlane.f32.xlu2 %v959_v38 }
 0x8f6   : > { %277 = vadd.xlane.f32.xlu0 %v276_v49 }
 0x961   : > { %v964_v57 = vpop.xlane.xlu0 %963 }
 0x962   : > { %vm966_vm6 = vcmp.eq.f32.partialorder %v1979_v58, %v964_v57  ;;  %v961_v26 = vpop.xlane.xlu2 %960 }
 0x963   : > { %v1572_v29 = vsel %vm966_vm6, 1.0, %v1679_v21  ;;  %vm965_vm7 = vcmp.eq.f32.partialorder %v1979_v58, %v961_v26 }
 0x964   : > { %v972_v30 = vmul.f32 %v1572_v29, %v1992_v56  ;;  %v1571_v39 = vsel %vm965_vm7, 1.0, %v1679_v21  ;;  %v2157_v29 = vld [vmem:[%s2358_s3 + $0x8] sm:$0xff] }
 0x965   : > { %v971_v36 = vmul.f32 %v1571_v39, %v1994_v25 }
 0x966   : > { %v977_v5 = vperm.slane %v972_v30, 7 }
 0x967   : > { %v976_v6 = vperm.slane %v971_v36, 7 }
 0x968   : > { %v979_v54 = vsel %vm973_vm8, %v977_v5, 0.0 }
 0x969   : > { %v2118_v52 = vadd.f32 %v979_v54, %v937_v48  ;;  %v978_v63 = vsel %vm973_vm8, %v976_v6, 0.0 }
 0x96a   : > { %v980_v62 = vadd.f32 %v978_v63, %v936_v2  ;;  %v281_v2 = vpop.xlane.xlu1 %280 }
 0x96b   : > { %v1243_v4 = vmul.f32 %v2118_v52, %v413_v3  ;;  %v1223_v48 = vmul.f32 %v2118_v52, %v397_v0  ;;  %v1203_v3 = vmul.f32 %v2118_v52, %v381_v40  ;;  %v278_v0 = vpop.xlane.xlu0 %277 }
 0x96c   : > { %v1242_v58 = vmul.f32 %v980_v62, %v412_v28  ;;  %v1202_v61 = vmul.f32 %v980_v62, %v380_v34  ;;  %v1222_v41 = vmul.f32 %v980_v62, %v396_v60  ;;  %v1191_v34 = vmul.f32 %v2118_v52, %v367_v42 }
 0x96d   : > { %1246 = vadd.xlane.f32.xlu2 %v1243_v4  ;;  %v1190_v28 = vmul.f32 %v980_v62, %v366_v31  ;;  %v982_v60 = vrot.slane %v980_v62, 4  ;;  %v1010_v50 = vmul.f32 %v980_v62, %v278_v0  ;;  %v2172_v4 = vld [vmem:[%s2358_s3] sm:$0xff] }
 0x96e   : > { %1244 = vadd.xlane.f32.xlu1 %v1242_v58  ;;  %1204 = vadd.xlane.f32.xlu0 %v1202_v61 }
 0x96f   : > { %v983_v24 = vadd.f32 %v982_v60, %v980_v62  ;;  %v1012_v51 = vrot.slane %v1010_v50, 4  ;;  %v988_v62 = vrot.slane %v2118_v52, 4 }
 0x971   : > { %v984_v18 = vrot.slane %v983_v24, 2  ;;  %v1013_v11 = vadd.f32 %v1012_v51, %v1010_v50 }
 0x973   : > { %v985_v15 = vadd.f32 %v984_v18, %v983_v24  ;;  %v1014_v35 = vrot.slane %v1013_v11, 2 }
 0x975   : > { %1224 = vadd.xlane.f32.xlu2 %v1222_v41  ;;  %v986_v43 = vrot.slane %v985_v15, 1  ;;  %v1015_v36 = vadd.f32 %v1014_v35, %v1013_v11 }
 0x976   : > { %1226 = vadd.xlane.f32.xlu0 %v1223_v48  ;;  %1206 = vadd.xlane.f32.xlu1 %v1203_v3 }
 0x977   : > { %v2150_v49 = vadd.f32 %v986_v43, %v985_v15  ;;  %v989_v15 = vadd.f32 %v988_v62, %v2118_v52 }
 0x979   : > { %v1024_v63 = vsub.f32 1.0, %v2150_v49 }
 0x97b   : > { %v1026_v51 = vmul.f32 4.0, %v1024_v63 }
 0x97d   : > { %1194 = vadd.xlane.f32.xlu2 %v1191_v34 }
 0x97e   : > { %1192 = vadd.xlane.f32.xlu1 %v1190_v28  ;;  %v1016_v28 = vrot.slane %v1015_v36, 1 }
 0x980   : > { %v1017_v11 = vadd.f32 %v1016_v28, %v1015_v36 }
 0x9e0   : > { %v2140_v37 = vpop.xlane.xlu2 %1246 }
 0x9e1   : > { %v1245_v40 = vpop.xlane.xlu1 %1244  ;;  %v1205_v20 = vpop.xlane.xlu0 %1204  ;;  %v1304_v46 = vmul.f32 0.5, %v2140_v37  ;;  %v1249_v36 = vsub.f32 %v2140_v37, %v2157_v29 }
 0x9e2   : > { %v1303_v16 = vmul.f32 0.5, %v1245_v40  ;;  %v1208_v58 = vsub.f32 %v1205_v20, %v2172_v4 }
 0x9e3   : > { %v1251_v62 = vand.u32 2147483647, %v1249_v36 }
 0x9e4   : > { %v1305_v22 = vsub.f32 %v1205_v20, %v1303_v16  ;;  %v1309_v42 = vadd.f32 %v1303_v16, %v1205_v20  ;;  %v1210_v50 = vand.u32 2147483647, %v1208_v58  ;;  %v1248_v16 = vsub.f32 %v1245_v40, %v2172_v4 }
 0x9e6   : > { %v1313_v31 = vsub.f32 %v1309_v42, %v1305_v22  ;;  %v1385_v23 = vmax.f32 %v1309_v42, %v1746_v10  ;;  %v1387_v7 = vmin.f32 %v1305_v22, %v1743_v9  ;;  %v1325_v33 = vmin.f32 %v1309_v42, %v1746_v10 }
 0x9e7   : > { %v1327_v19 = vmax.f32 %v1305_v22, %v1743_v9  ;;  %v1011_v42 = vmul.f32 %v2118_v52, %v281_v2  ;;  %v1250_v40 = vand.u32 2147483647, %v1248_v16 }
 0x9e8   : > { %v1389_v32 = vsub.f32 %v1385_v23, %v1387_v7  ;;  %v1225_v5 = vpop.xlane.xlu2 %1224 }
 0x9e9   : > { %v1207_v38 = vpop.xlane.xlu1 %1206  ;;  %v1329_v45 = vsub.f32 %v1325_v33, %v1327_v19  ;;  %v1299_v3 = vmul.f32 0.5, %v1225_v5  ;;  %v2191_v20 = vpop.xlane.xlu0 %1226  ;;  %v2201_v33 = vadd.f32 %v1026_v51, %v1017_v11  ;;  %v990_v19 = vrot.slane %v989_v15, 2 }
 0x9ea   : > { %v2147_v47 = vsub.f32 %v1207_v38, %v1304_v46  ;;  %1393 = vrot.lane.b32.xlu1 %v1389_v32, %s1675_s26  ;;  %v2152_v57 = vadd.f32 %v1304_v46, %v1207_v38  ;;  %v1209_v30 = vsub.f32 %v1207_v38, %v2157_v29  ;;  %v1229_v23 = vsub.f32 %v2191_v20, %v2157_v29  ;;  %v1641_v11 = vpop.eup %1640 }
 0x9eb   : > { %v1331_v26 = vmax.f32 %v1329_v45, 0.0  ;;  %v1018_v46 = vrot.slane %v1011_v42, 4  ;;  %v1030_v32 = vcvt.s32.f32 %v2008_v1  ;;  %v1228_v52 = vsub.f32 %v1225_v5, %v2172_v4 }
 0x9ec   : > { %v1388_v39 = vmin.f32 %v2147_v47, %v1750_v12  ;;  %v1314_v6 = vsub.f32 %v2152_v57, %v2147_v47  ;;  %v1386_v54 = vmax.f32 %v2152_v57, %v1752_v13  ;;  %v1326_v41 = vmin.f32 %v2152_v57, %v1752_v13 }
 0x9ed   : > { %1335 = vrot.lane.b32.xlu2 %v1331_v26, %s1675_s26  ;;  %v1328_v48 = vmax.f32 %v2147_v47, %v1750_v12  ;;  %v1211_v34 = vand.u32 2147483647, %v1209_v30  ;;  %v1231_v2 = vand.u32 2147483647, %v1229_v23  ;;  %vm1031_vm3 = vcmp.eq.f32.partialorder %v1030_v32, %v2201_v33 }
 0x9ee   : > { %v1390_v61 = vsub.f32 %v1386_v54, %v1388_v39  ;;  %v1019_v35 = vadd.f32 %v1018_v46, %v1011_v42  ;;  %v1573_v38 = vsel %vm1031_vm3, 1.0, %v1679_v21  ;;  %v1230_v45 = vand.u32 2147483647, %v1228_v52  ;;  %v1662_v39 = vld [vmem:[%s1839_s8] sm:$0x1f] }
 0x9ef   : > { %v1330_v18 = vsub.f32 %v1326_v41, %v1328_v48  ;;  %v1037_v1 = vmul.f32 %v1662_v39, %v1573_v38  ;;  %vm1098_vm9 = vcmp.ge.f32.partialorder %v1662_v39, %v1854_v17  ;;  %v1054_v46 = vmul.f32 0.6931472, %v1641_v11 }
 0x9f0   : > { %1395 = vrot.lane.b32.xlu0 %v1390_v61, %s1675_s26  ;;  %v1020_v30 = vrot.slane %v1019_v35, 2  ;;  %v1100_v28 = vsel %vm1098_vm9, %v1030_v32, 5.0  ;;  %vm1061_vm12 = vcmp.eq.f32.partialorder %v2201_v33, 4.0 }
 0x9f1   : > { %v2180_v60 = vpop.xlane.xlu1 %1192  ;;  %v1332_v7 = vmax.f32 %v1330_v18, 0.0  ;;  %v1039_v63 = vsel %vm222_vm0, %v1037_v1, 0.0  ;;  %v1102_v51 = vsel %vm222_vm0, %v1100_v28, inf }
 0x9f2   : > { %v2183_v24 = vsub.f32 %v2180_v60, %v1299_v3  ;;  %v2186_v0 = vadd.f32 %v1299_v3, %v2180_v60  ;;  %1216 = vrot.lane.b32.xlu1 %v1211_v34, %s1675_s26  ;;  %v1021_v54 = vadd.f32 %v1020_v30, %v1019_v35  ;;  %v1040_v61 = vrot.slane %v1039_v63, 4 }
 0x9f3   : > { %v1103_v16 = vrot.slane %v1102_v51, 4  ;;  %v1057_v35 = vadd.f32 %v1054_v46, %v1854_v17  ;;  %v2245_v46 = vpop.xlane.xlu2 %1194 }
 0x9f4   : > { %v1311_v22 = vsub.f32 %v2186_v0, %v2183_v24  ;;  %v1022_v41 = vrot.slane %v1021_v54, 1  ;;  %v1041_v3 = vadd.f32 %v1040_v61, %v1039_v63 }
 0x9f5   : > { %1214 = vrot.lane.b32.xlu2 %v1210_v50, %s1675_s26  ;;  %v1663_v50 = vld [vmem:[%s1839_s8 + $0x8] sm:$0x1f] }
 0x9f6   : > { %v2197_v43 = vmul.f32 %v1313_v31, %v1311_v22  ;;  %v991_v31 = vadd.f32 %v990_v19, %v989_v15  ;;  %v1023_v34 = vadd.f32 %v1022_v41, %v1021_v54  ;;  %vm1099_vm10 = vcmp.ge.f32.partialorder %v1663_v50, %v1849_v14 }
 0x9f7   : > { %v1042_v18 = vrot.slane %v1041_v3, 2  ;;  %v1101_v15 = vsel %vm1099_vm10, %v1030_v32, 5.0  ;;  %v1104_v19 = vmin.f32 %v1102_v51, %v1103_v16  ;;  %vm1266_vm10 = vcmask 7168  }
 0x9f8   : > { %1337 = vrot.lane.b32.xlu0 %v1332_v7, %s1675_s26  ;;  %v992_v26 = vrot.slane %v991_v31, 1  ;;  %v1109_v22 = vsel %vm222_vm0, %v1101_v15, inf }
 0x9f9   : > { %v1043_v42 = vadd.f32 %v1042_v18, %v1041_v3  ;;  %v1110_v23 = vrot.slane %v1109_v22, 4  ;;  %v1105_v8 = vrot.slane %v1104_v19, 2 }
 0x9fa   : > { %1254 = vrot.lane.b32.xlu1 %v1250_v40, %s1680_s19  ;;  %v2213_v5 = vadd.f32 %v992_v26, %v991_v31 }
 0x9fb   : > { %v1044_v40 = vrot.slane %v1043_v42, 1  ;;  %v1106_v39 = vmin.f32 %v1104_v19, %v1105_v8 }
 0x9fc   : > { %v1025_v58 = vsub.f32 1.0, %v2213_v5 }
 0x9fd   : > { %1236 = vrot.lane.b32.xlu2 %v1231_v2, %s1674_s23  ;;  %v1111_v2 = vmin.f32 %v1109_v22, %v1110_v23  ;;  %v1045_v31 = vadd.f32 %v1044_v40, %v1043_v42 }
 0x9fe   : > { %v1027_v48 = vmul.f32 4.0, %v1025_v58 }
 0x9ff   : > { %v1112_v38 = vrot.slane %v1111_v2, 2  ;;  %v1059_v30 = vsub.f32 %v1057_v35, %v1045_v31  ;;  %v1343_v31 = vadd.f32 %v2197_v43, %v1825_v53  ;;  %v1381_v53 = vmin.f32 %v2183_v24, %v1743_v9 }
 0xa00   : > { %1234 = vrot.lane.b32.xlu0 %v1230_v45, %s1674_s23  ;;  %v1029_v37 = vadd.f32 %v1027_v48, %v1023_v34  ;;  %v1681_v45 = vmov 1.0  }
 0xa01   : > { %v1063_v26 = vsel %vm1061_vm12, 0.1, %v1681_v45  ;;  %v1113_v54 = vmin.f32 %v1111_v2, %v1112_v38  ;;  %v996_v38 = vrot.slane %v1994_v25, 4 }
 0xa02   : > { %vm1032_vm11 = vcmp.eq.f32.partialorder %v1030_v32, %v1029_v37  ;;  %v1065_v36 = vmul.f32 %v1960_v44, %v1063_v26  ;;  %vm1062_vm13 = vcmp.eq.f32.partialorder %v1029_v37, 4.0 }
 0xa03   : > { %v1574_v7 = vsel %vm1032_vm11, 1.0, %v1679_v21  ;;  %v1114_v17 = vrot.slane %v1113_v54, 1  ;;  %v1064_v61 = vsel %vm1062_vm13, 0.1, %v1681_v45 }
 0xa04   : > { %v1038_v52 = vmul.f32 %v1663_v50, %v1574_v7  ;;  %v1067_v63 = vmul.f32 %v1065_v36, %v1059_v30  ;;  %v1066_v3 = vmul.f32 %v1960_v44, %v1064_v61  ;;  %v1643_v50 = vpop.eup %1642  ;;  %v997_v30 = vadd.f32 %v996_v38, %v1994_v25 }
 0xa05   : > { %v1115_v34 = vmin.f32 %v1113_v54, %v1114_v17  ;;  %v1056_v16 = vmul.f32 0.6931472, %v1643_v50 }
 0xa06   : > { %v1046_v32 = vsel %vm222_vm0, %v1038_v52, 0.0 }
 0xa07   : > { %v1047_v1 = vrot.slane %v1046_v32, 4  ;;  %vm1117_vm14 = vcmp.eq.f32.partialorder %v1115_v34, %v1029_v37  ;;  %v1058_v11 = vadd.f32 %v1056_v16, %v1849_v14  ;;  %vm1157_vm1 = vcmp.ne.f32.partialorder %v1115_v34, 4.0 }
 0xa08   : > { %1256 = vrot.lane.b32.xlu0 %v1251_v62, %s1680_s19  ;;  %v1107_v62 = vrot.slane %v1106_v39, 1  ;;  %v1576_v22 = vsel %vm1117_vm14, 1.0, %v1679_v21  ;;  %v1578_v40 = vsel %vm1157_vm1, 1.0, %v1679_v21 }
 0xa09   : > { %v1048_v58 = vadd.f32 %v1047_v1, %v1046_v32  ;;  %v1123_v59 = vmul.f32 %v1576_v22, %v2213_v5  ;;  %v1163_v14 = vmul.f32 %v1578_v40, %v1960_v44  ;;  %v1002_v32 = vrot.slane %v1992_v56, 4 }
 0xa0a   : > { %v1108_v41 = vmin.f32 %v1106_v39, %v1107_v62  ;;  %v1379_v1 = vmax.f32 %v2186_v0, %v1746_v10 }
 0xa0b   : > { %v1049_v48 = vrot.slane %v1048_v58, 2  ;;  %v1003_v45 = vadd.f32 %v1002_v32, %v1992_v56 }
 0xa0c   : > { %vm1156_vm0 = vcmp.ne.f32.partialorder %v1108_v41, 4.0  ;;  %vm1116_vm15 = vcmp.eq.f32.partialorder %v1108_v41, %v2201_v33  ;;  %v1317_v33 = vmin.f32 %v2186_v0, %v1746_v10 }
 0xa0d   : > { %v1050_v28 = vadd.f32 %v1049_v48, %v1048_v58  ;;  %v1577_v18 = vsel %vm1156_vm0, 1.0, %v1679_v21  ;;  %v1575_v23 = vsel %vm1116_vm15, 1.0, %v1679_v21  ;;  %v1004_v43 = vrot.slane %v1003_v45, 2 }
 0xa0e   : > { %v1162_v51 = vmul.f32 %v1577_v18, %v1960_v44  ;;  %v1122_v7 = vmul.f32 %v1575_v23, %v2150_v49  ;;  %v998_v58 = vrot.slane %v997_v30, 2  ;;  %v1383_v48 = vsub.f32 %v1379_v1, %v1381_v53 }
 0xa0f   : > { %v1051_v15 = vrot.slane %v1050_v28, 1 }
 0xa11   : > { %v1052_v42 = vadd.f32 %v1051_v15, %v1050_v28 }
 0xa13   : > { %v1060_v37 = vsub.f32 %v1058_v11, %v1052_v42 }
 0xa15   : > { %v1068_v19 = vmul.f32 %v1066_v3, %v1060_v37 }
 0xa24   : > { %1132 = vadd.xlane.f32.xlu1 %v2150_v49 }
 0xa26   : > { %1069 = vadd.xlane.f32.xlu2 %v1067_v63 }
 0xa2c   : > { %1078 = vadd.xlane.f32.xlu1 %v1066_v3  ;;  %v1005_v3 = vadd.f32 %v1004_v43, %v1003_v45 }
 0xa2e   : > { %1076 = vadd.xlane.f32.xlu2 %v1065_v36  ;;  %v1300_v36 = vmul.f32 0.5, %v2191_v20  ;;  %v999_v20 = vadd.f32 %v998_v58, %v997_v30  ;;  %v1006_v16 = vrot.slane %v1005_v3, 1 }
 0xa30   : > { %v1302_v17 = vsub.f32 %v2245_v46, %v1300_v36  ;;  %v1308_v61 = vadd.f32 %v1300_v36, %v2245_v46  ;;  %v1000_v22 = vrot.slane %v999_v20, 1 }
 0xa32   : > { %1134 = vadd.xlane.f32.xlu0 %v2213_v5  ;;  %v1319_v5 = vmax.f32 %v2183_v24, %v1743_v9  ;;  %v1380_v28 = vmax.f32 %v1308_v61, %v1752_v13  ;;  %v1382_v50 = vmin.f32 %v1302_v17, %v1750_v12  ;;  %v1318_v42 = vmin.f32 %v1308_v61, %v1752_v13 }
 0xa33   : > { %v1320_v11 = vmax.f32 %v1302_v17, %v1750_v12  ;;  %v1312_v23 = vsub.f32 %v1308_v61, %v1302_v17  ;;  %v2273_v40 = vadd.f32 %v1000_v22, %v999_v20 }
 0xa34   : > { %1164 = vadd.xlane.f32.xlu1 %v1162_v51  ;;  %v1321_v52 = vsub.f32 %v1317_v33, %v1319_v5 }
 0xa35   : > { %v1322_v5 = vsub.f32 %v1318_v42, %v1320_v11 }
 0xa36   : > { %1126 = vadd.xlane.f32.xlu2 %v1123_v59  ;;  %v1323_v2 = vmax.f32 %v1321_v52, 0.0  ;;  %v1384_v59 = vsub.f32 %v1380_v28, %v1382_v50  ;;  %v1316_v52 = vmul.f32 %v1314_v6, %v1312_v23 }
 0xa38   : > { %v1344_v32 = vadd.f32 %v1316_v52, %v1829_v55 }
 0xa3a   : > { %1124 = vadd.xlane.f32.xlu0 %v1122_v7  ;;  %v2269_v7 = vadd.f32 %v1006_v16, %v1005_v3 }
 0xa3c   : > { %v1008_v12 = vadd.f32 %v2269_v7, %v2273_v40 }
 0xa3e   : > { %1071 = vadd.xlane.f32.xlu2 %v1068_v19  ;;  %v2287_v38 = vmax.f32 %v1008_v12, 1.0 }
 0xa42   : > { %1166 = vadd.xlane.f32.xlu0 %v1163_v14 }
 0xa47   : > { %v1336_v49 = vpop.permute.xlu2 %1335 }
 0xa48   : > { %v1341_v8 = vmul.f32 %v1336_v49, %v1323_v2  ;;  %v1324_v49 = vmax.f32 %v1322_v5, 0.0 }
 0xa4a   : > { %v2250_v21 = vsub.f32 %v1343_v31, %v1341_v8 }
 0xa4c   : > { %v1347_v35 = vmax.f32 %v2250_v21, 1e-12 }
 0xa4e   : > { %1644 = vrcp.f32 %v1347_v35  ;;  %v1360_v54 = vand.u32 2147483648, %v1347_v35  ;;  %v1358_v62 = vand.u32 2147483647, %v1347_v35  ;;  %vm1354_vm4 = vweird.f32 %v1347_v35 }
 0xa50   : > { %v1361_v10 = vor.u32 1.1754944e-38, %v1360_v54  ;;  %vm1359_vm6 = vcmp.eq.f32.partialorder %v1358_v62, 8.507059e+37 }
 0xa54   : > { %v1645_v44 = vpop.eup %1644 }
 0xa55   : > { %v1350_v26 = vmul.f32 %v1645_v44, %v1347_v35  ;;  %vm1355_vm2 = vweird.f32 %v1645_v44 }
 0xa56   : > { %vm1356_vm5 = vmor %vm1354_vm4, %vm1355_vm2 }
 0xa57   : > { %v1351_v39 = vsub.f32 1.0, %v1350_v26 }
 0xa59   : > { %v1352_v63 = vmul.f32 %v1645_v44, %v1351_v39 }
 0xa5b   : > { %v1353_v41 = vadd.f32 %v1645_v44, %v1352_v63 }
 0xa5c   : > { %v1394_v0 = vpop.permute.xlu1 %1393 }
 0xa5d   : > { %v1357_v9 = vsel %vm1356_vm5, %v1645_v44, %v1353_v41  ;;  %v1399_v24 = vmul.f32 %v1394_v0, %v1383_v48  ;;  %v1215_v44 = vpop.permute.xlu2 %1214  ;;  %vm1289_vm5 = vweird.f32 %v2287_v38 }
 0xa5e   : > { %v1362_v34 = vsel %vm1359_vm6, %v1361_v10, %v1357_v9 }
 0xa5f   : > { %v1363_v18 = vmul.f32 %v1362_v34, %v1341_v8  ;;  %v1401_v51 = vsub.f32 %v1399_v24, %v2250_v21  ;;  %v1403_v15 = vmax.f32 %v1399_v24, 1e-12  ;;  %v1196_v8 = vsub.f32 %v2180_v60, %v2172_v4 }
 0xa60   : > { %v1197_v60 = vsub.f32 %v2245_v46, %v2157_v29 }
 0xa61   : > { %1646 = vrcp.f32 %v1403_v15  ;;  %v1416_v31 = vand.u32 2147483648, %v1403_v15  ;;  %v1414_v57 = vand.u32 2147483647, %v1403_v15  ;;  %vm1410_vm8 = vweird.f32 %v1403_v15 }
 0xa62   : > { %v1396_v37 = vpop.permute.xlu0 %1395  ;;  %v1198_v39 = vand.u32 2147483647, %v1196_v8  ;;  %v1199_v62 = vand.u32 2147483647, %v1197_v60 }
 0xa63   : > { %v2271_v19 = vmul.f32 %v1396_v37, %v1384_v59  ;;  %v1417_v4 = vor.u32 1.1754944e-38, %v1416_v31  ;;  %vm1415_vm9 = vcmp.eq.f32.partialorder %v1414_v57, 8.507059e+37 }
 0xa64   : > { %v1217_v21 = vpop.permute.xlu1 %1216  ;;  %v1220_v54 = vadd.f32 %v1215_v44, %v1198_v39 }
 0xa65   : > { %v2276_v33 = vmax.f32 %v2271_v19, 1e-12  ;;  %v1221_v29 = vadd.f32 %v1217_v21, %v1199_v62  ;;  %v1237_v9 = vpop.permute.xlu2 %1236 }
 0xa67   : > { %v1647_v14 = vpop.eup %1646  ;;  %1648 = vrcp.f32 %v2276_v33  ;;  %v1241_v50 = vadd.f32 %v1237_v9, %v1221_v29  ;;  %vm1425_vm12 = vweird.f32 %v2276_v33 }
 0xa68   : > { %v1406_v13 = vmul.f32 %v1647_v14, %v1403_v15  ;;  %vm1411_vm7 = vweird.f32 %v1647_v14  ;;  %1650 = vrcp.f32 %v2287_v38  ;;  %v1431_v15 = vand.u32 2147483648, %v2276_v33 }
 0xa69   : > { %vm1412_vm3 = vmor %vm1410_vm8, %vm1411_vm7 }
 0xa6a   : > { %v1407_v2 = vsub.f32 1.0, %v1406_v13  ;;  %v1338_v35 = vpop.permute.xlu0 %1337  ;;  %v1432_v12 = vor.u32 1.1754944e-38, %v1431_v15 }
 0xa6b   : > { %v2289_v6 = vmul.f32 %v1338_v35, %v1324_v49 }
 0xa6c   : > { %v1408_v47 = vmul.f32 %v1647_v14, %v1407_v2  ;;  %v1255_v46 = vpop.permute.xlu1 %1254 }
 0xa6d   : > { %v2291_v45 = vpop.eup %1648  ;;  %v2294_v30 = vsub.f32 %v1344_v32, %v2289_v6 }
 0xa6e   : > { %v1409_v26 = vadd.f32 %v1647_v14, %v1408_v47  ;;  %v1421_v55 = vmul.f32 %v2291_v45, %v2276_v33  ;;  %v2303_v48 = vpop.eup %1650  ;;  %vm1426_vm11 = vweird.f32 %v2291_v45 }
 0xa6f   : > { %v1348_v53 = vmax.f32 %v2294_v30, 1e-12  ;;  %vm2315_vm13 = vmor %vm1425_vm12, %vm1426_vm11  ;;  %v1402_v8 = vsub.f32 %v2271_v19, %v2294_v30  ;;  %vm1290_vm4 = vweird.f32 %v2303_v48 }
 0xa70   : > { %v1413_v1 = vsel %vm1412_vm3, %v1647_v14, %v1409_v26  ;;  %v1422_v36 = vsub.f32 1.0, %v1421_v55  ;;  %vm1291_vm6 = vmor %vm1289_vm5, %vm1290_vm4  ;;  %vm1478_vm4 = vcmp.eq.s32.totalorder %v1935_v27, 4  ;;  %vm1486_vm5 = vcmask 57344  }
 0xa71   : > { %v1418_v43 = vsel %vm1415_vm9, %v1417_v4, %v1413_v1  ;;  %1652 = vrcp.f32 %v1348_v53  ;;  %v1373_v23 = vand.u32 2147483647, %v1348_v53  ;;  %v1375_v37 = vand.u32 2147483648, %v1348_v53 }
 0xa72   : > { %v1419_v63 = vmul.f32 %v1418_v43, %v1401_v51  ;;  %v1235_v58 = vpop.permute.xlu0 %1234  ;;  %v1423_v61 = vmul.f32 %v2291_v45, %v1422_v36  ;;  %v1429_v51 = vand.u32 2147483647, %v2276_v33  ;;  %vm1369_vm15 = vweird.f32 %v1348_v53 }
 0xa73   : > { %v1240_v41 = vadd.f32 %v1235_v58, %v1220_v54  ;;  %v1376_v32 = vor.u32 1.1754944e-38, %v1375_v37  ;;  %vm1374_vm2 = vcmp.eq.f32.partialorder %v1373_v23, 8.507059e+37 }
 0xa74   : > { %v1435_v17 = vsub.f32 %v1363_v18, %v1419_v63  ;;  %v1424_v24 = vadd.f32 %v2291_v45, %v1423_v61  ;;  %v1285_v18 = vmul.f32 %v2303_v48, %v2287_v38  ;;  %vm1430_vm14 = vcmp.eq.f32.partialorder %v1429_v51, 8.507059e+37 }
 0xa75   : > { %v1260_v10 = vadd.f32 %v1255_v46, %v1240_v41  ;;  %v1293_v61 = vand.u32 2147483647, %v2287_v38 }
 0xa76   : > { %v1437_v3 = vsub.f32 1.0, %v1435_v17  ;;  %v1428_v11 = vsel %vm2315_vm13, %v2291_v45, %v1424_v24  ;;  %v1286_v2 = vsub.f32 1.0, %v1285_v18 }
 0xa77   : > { %v1653_v0 = vpop.eup %1652  ;;  %v1262_v20 = vmul.f32 %v1260_v10, %v1994_v25  ;;  %v1433_v35 = vsel %vm1430_vm14, %v1432_v12, %v1428_v11  ;;  %vm1294_vm7 = vcmp.eq.f32.partialorder %v1293_v61, 8.507059e+37  ;;  %vm1464_vm14 = vcmp.eq.s32.totalorder %v1935_v27, 1 }
 0xa78   : > { %v1439_v34 = vmul.f32 %v1437_v3, %v1994_v25  ;;  %v1365_v28 = vmul.f32 %v1653_v0, %v1348_v53  ;;  %vm1370_vm0 = vweird.f32 %v1653_v0  ;;  %v1434_v55 = vmul.f32 %v1433_v35, %v1402_v8 }
 0xa79   : > { %v1267_v16 = vsel %vm1266_vm10, %v1262_v20, 0.0  ;;  %vm1371_vm1 = vmor %vm1369_vm15, %vm1370_vm0  ;;  %v1287_v1 = vmul.f32 %v2303_v48, %v1286_v2  ;;  %vm1461_vm15 = vcmp.eq.s32.totalorder %v1935_v27, 0 }
 0xa7a   : > { %v1366_v59 = vsub.f32 1.0, %v1365_v28  ;;  %v1268_v42 = vrot.slane %v1267_v16, 4  ;;  %v1257_v25 = vpop.permute.xlu0 %1256  ;;  %v1443_v14 = vsel %vm1266_vm10, %v1439_v34, 0.0 }
 0xa7b   : > { %v1261_v5 = vadd.f32 %v1257_v25, %v1241_v50  ;;  %v1444_v21 = vrot.slane %v1443_v14, 4  ;;  %v1288_v54 = vadd.f32 %v2303_v48, %v1287_v1 }
 0xa7c   : > { %v1367_v52 = vmul.f32 %v1653_v0, %v1366_v59  ;;  %v1269_v33 = vadd.f32 %v1268_v42, %v1267_v16 }
 0xa7d   : > { %v1263_v13 = vmul.f32 %v1261_v5, %v1992_v56  ;;  %v1445_v39 = vadd.f32 %v1444_v21, %v1443_v14  ;;  %v1292_v3 = vsel %vm1291_vm6, %v2303_v48, %v1288_v54 }
 0xa7e   : > { %v1368_v49 = vadd.f32 %v1653_v0, %v1367_v52  ;;  %v1270_v31 = vrot.slane %v1269_v33, 2 }
 0xa7f   : > { %v1274_v47 = vsel %vm1266_vm10, %v1263_v13, 0.0  ;;  %v1446_v63 = vrot.slane %v1445_v39, 2 }
 0xa80   : > { %v1372_v57 = vsel %vm1371_vm1, %v1653_v0, %v1368_v49  ;;  %v1271_v45 = vadd.f32 %v1270_v31, %v1269_v33  ;;  %v1275_v44 = vrot.slane %v1274_v47, 4  ;;  %vm1467_vm1 = vcmp.eq.s32.totalorder %v1935_v27, 2 }
 0xa81   : > { %v1377_v26 = vsel %vm1374_vm2, %v1376_v32, %v1372_v57  ;;  %v1447_v10 = vadd.f32 %v1446_v63, %v1445_v39  ;;  %vm1470_vm2 = vcmp.eq.s32.totalorder %v1935_v27, 3 }
 0xa82   : > { %v1378_v4 = vmul.f32 %v1377_v26, %v2289_v6  ;;  %v1276_v60 = vadd.f32 %v1275_v44, %v1274_v47  ;;  %v1272_v53 = vrot.slane %v1271_v45, 1  ;;  %v1295_v6 = vand.u32 2147483648, %v2287_v38 }
 0xa83   : > { %v1448_v38 = vrot.slane %v1447_v10, 1 }
 0xa84   : > { %v1436_v19 = vsub.f32 %v1378_v4, %v1434_v55  ;;  %v1277_v30 = vrot.slane %v1276_v60, 2  ;;  %v1273_v17 = vadd.f32 %v1272_v53, %v1271_v45  ;;  %v1296_v9 = vor.u32 1.1754944e-38, %v1295_v6 }
 0xa85   : > { %v1449_v51 = vadd.f32 %v1448_v38, %v1447_v10 }
 0xa86   : > { %v1438_v43 = vsub.f32 1.0, %v1436_v19  ;;  %v1278_v36 = vadd.f32 %v1277_v30, %v1276_v60  ;;  %v1281_v0 = vsel %vm1266_vm10, %v1273_v17, 0.0  ;;  %v1297_v34 = vsel %vm1294_vm7, %v1296_v9, %v1292_v3 }
 0xa87   : > { %v1457_v48 = vsel %vm1266_vm10, %v1449_v51, 0.0 }
 0xa88   : > { %v1440_v62 = vmul.f32 %v1438_v43, %v1992_v56  ;;  %v1279_v58 = vrot.slane %v1278_v36, 1 }
 0xa8a   : > { %v1450_v41 = vsel %vm1266_vm10, %v1440_v62, 0.0  ;;  %v1280_v29 = vadd.f32 %v1279_v58, %v1278_v36 }
 0xa8b   : > { %v1451_v46 = vrot.slane %v1450_v41, 4 }
 0xa8c   : > { %v1282_v56 = vsel %vm1266_vm10, %v1280_v29, 0.0 }
 0xa8d   : > { %v1452_v24 = vadd.f32 %v1451_v46, %v1450_v41  ;;  %v1283_v20 = vadd.f32 %v1282_v56, %v1281_v0 }
 0xa8f   : > { %v1453_v28 = vrot.slane %v1452_v24, 2  ;;  %v1298_v50 = vmul.f32 %v1297_v34, %v1283_v20 }
 0xa91   : > { %1473 = vperm.xlu1 %1622, %v1298_v50   ;;  %v1454_v18 = vadd.f32 %v1453_v28, %v1452_v24 }
 0xa93   : > { %v1455_v15 = vrot.slane %v1454_v18, 1 }
 0xa95   : > { %v1456_v16 = vadd.f32 %v1455_v15, %v1454_v18 }
 0xa97   : > { %v1458_v22 = vsel %vm1266_vm10, %v1456_v16, 0.0  ;;  %v1133_v25 = vpop.xlane.xlu1 %1132 }
 0xa98   : > { %v1459_v59 = vadd.f32 %v1458_v22, %v1457_v48 }
 0xa99   : > { %v1070_v11 = vpop.xlane.xlu2 %1069 }
 0xa9a   : > { %v1460_v42 = vmul.f32 %v1459_v59, %v1297_v34 }
 0xa9c   : > { %1481 = vperm.xlu0 %1623, %v1460_v42  }
 0xa9f   : > { %v1079_v14 = vpop.xlane.xlu1 %1078 }
 0xaa1   : > { %v1077_v52 = vpop.xlane.xlu2 %1076 }
 0xaa2   : > { %v1082_v33 = vadd.f32 %v1079_v14, %v1077_v52 }
 0xaa4   : > { %v1094_v30 = vand.u32 2147483648, %v1082_v33  ;;  %vm1088_vm12 = vweird.f32 %v1082_v33  ;;  %v1092_v43 = vand.u32 2147483647, %v1082_v33 }
 0xaa5   : > { %v1135_v23 = vpop.xlane.xlu0 %1134 }
 0xaa6   : > { %v1138_v37 = vadd.f32 %v1135_v23, %v1133_v25  ;;  %v1095_v17 = vor.u32 1.1754944e-38, %v1094_v30  ;;  %vm1093_vm0 = vcmp.eq.f32.partialorder %v1092_v43, 8.507059e+37 }
 0xaa7   : > { %v1165_v1 = vpop.xlane.xlu1 %1164 }
 0xaa8   : > { %v1139_v5 = vmax.f32 %v1138_v37, 1.0  ;;  %v1180_v63 = vsub.f32 %v1165_v1, %v2273_v40 }
 0xaa9   : > { %v1127_v32 = vpop.xlane.xlu2 %1126 }
 0xaaa   : > { %1654 = vrcp.f32 %v1139_v5  ;;  %v1151_v57 = vand.u32 2147483648, %v1139_v5  ;;  %vm1145_vm3 = vweird.f32 %v1139_v5  ;;  %v1149_v45 = vand.u32 2147483647, %v1139_v5 }
 0xaab   : > { %1656 = vrcp.f32 %v1082_v33  ;;  %v1182_v29 = vand.u32 2147483647, %v1180_v63 }
 0xaac   : > { %v1152_v55 = vor.u32 1.1754944e-38, %v1151_v57  ;;  %vm1150_vm10 = vcmp.eq.f32.partialorder %v1149_v45, 8.507059e+37 }
 0xaad   : > { %v1125_v31 = vpop.xlane.xlu0 %1124 }
 0xaae   : > { %v1130_v26 = vadd.f32 %v1127_v32, %v1125_v31 }
 0xab0   : > { %v1655_v12 = vpop.eup %1654  ;;  %v1131_v53 = vmul.f32 100.0, %v1130_v26 }
 0xab1   : > { %v1141_v13 = vmul.f32 %v1655_v12, %v1139_v5  ;;  %v1657_v2 = vpop.eup %1656  ;;  %vm1146_vm8 = vweird.f32 %v1655_v12  ;;  %v1072_v54 = vpop.xlane.xlu2 %1071 }
 0xab2   : > { %v1084_v8 = vmul.f32 %v1657_v2, %v1082_v33  ;;  %vm1147_vm9 = vmor %vm1145_vm3, %vm1146_vm8  ;;  %vm1089_vm11 = vweird.f32 %v1657_v2  ;;  %v1075_v6 = vadd.f32 %v1072_v54, %v1070_v11 }
 0xab3   : > { %v1142_v49 = vsub.f32 1.0, %v1141_v13  ;;  %vm1090_vm13 = vmor %vm1088_vm12, %vm1089_vm11 }
 0xab4   : > { %v1085_v35 = vsub.f32 1.0, %v1084_v8 }
 0xab5   : > { %v1143_v21 = vmul.f32 %v1655_v12, %v1142_v49  ;;  %v1167_v60 = vpop.xlane.xlu0 %1166 }
 0xab6   : > { %v1086_v44 = vmul.f32 %v1657_v2, %v1085_v35  ;;  %v1181_v36 = vsub.f32 %v1167_v60, %v2269_v7 }
 0xab7   : > { %v1144_v47 = vadd.f32 %v1655_v12, %v1143_v21 }
 0xab8   : > { %v1087_v39 = vadd.f32 %v1657_v2, %v1086_v44  ;;  %v1183_v61 = vand.u32 2147483647, %v1181_v36 }
 0xab9   : > { %v1148_v4 = vsel %vm1147_vm9, %v1655_v12, %v1144_v47 }
 0xaba   : > { %v1153_v19 = vsel %vm1150_vm10, %v1152_v55, %v1148_v4  ;;  %v1091_v58 = vsel %vm1090_vm13, %v1657_v2, %v1087_v39  ;;  %v1188_v10 = vadd.f32 %v1183_v61, %v1182_v29 }
 0xabb   : > { %v1154_v62 = vmul.f32 %v1153_v19, %v1131_v53  ;;  %v1096_v41 = vsel %vm1093_vm0, %v1095_v17, %v1091_v58 }
 0xabc   : > { %v1097_v3 = vmul.f32 %v1096_v41, %v1075_v6  ;;  %v1189_v56 = vmul.f32 0.5, %v1188_v10 }
 0xabd   : > { %v1155_v46 = vsub.f32 100.0, %v1154_v62 }
 0xabe   : > { %v1462_v0 = vsel %vm1461_vm15, %v1097_v3, 0.0  ;;  %v1468_v24 = vsel %vm1467_vm1, %v1189_v56, 0.0 }
 0xabf   : > { %v1465_v7 = vsel %vm1464_vm14, %v1155_v46, 0.0 }
 0xac0   : > { %v1466_v40 = vadd.f32 %v1465_v7, %v1462_v0 }
 0xac2   : > { %v1469_v34 = vadd.f32 %v1468_v24, %v1466_v40 }
 0xb03   : > { %v1474_v9 = vpop.permute.xlu1 %1473 }
 0xb04   : > { %v1476_v20 = vsel %vm1470_vm2, %v1474_v9, 0.0 }
 0xb05   : > { %v1477_v28 = vadd.f32 %v1476_v20, %v1469_v34 }
 0xb0e   : > { %v1482_v50 = vpop.permute.xlu0 %1481 }
 0xb0f   : > { %v1484_v38 = vsel %vm1478_vm4, %v1482_v50, 0.0 }
 0xb10   : > { %v1485_v18 = vadd.f32 %v1484_v38, %v1477_v28 }
 0xb12   : > { %1487 = vst.msk [vmem:[%s213_s22] sm:$0x1] %vm1486_vm5, %v1485_v18 }
 0xb13 PF: > { %s14_s15 = sadd.s32 1, %s1670_s15  }
 0xb14   : > { %p11_p4 = scmp.ge.s32.totalorder %s14_s15, 4  }
 0xb16   :  { %13 = sbr.rel (!%p11_p4) target bundleno = 1 (0x1), region = 69 }

</bundles_post_ra>
